<compile_context>
chip_gen: v7x
topology: tpu7x:2x2x1
jax: 0.10.0
libtpu: 0.0.40
codegen_flags: <defaults>
</compile_context>

<pallas_src>
import functools
import math
from dataclasses import dataclass
from typing import Optional

import numpy as np
import jax
import jax.numpy as jnp
from jax import lax
from jax.experimental import pallas as pl
from jax.experimental.pallas import tpu as pltpu

LANE = 128


def _round_up(x, m):
    return (x + m - 1) // m * m


# ----------------------------- model config -----------------------------

@dataclass
class ModelArgs:
    dim: int = 32
    n_layers: int = 2
    n_heads: int = 4
    n_kv_heads: Optional[int] = 2
    vocab_size: int = 64
    multiple_of: int = 16
    ffn_dim_multiplier: Optional[float] = None
    norm_eps: float = 1e-5
    rope_theta: float = 500000.0
    max_batch_size: int = 4
    max_seq_len: int = 16


def ffn_hidden_dim(dim, multiple_of, ffn_dim_multiplier):
    hidden_dim = 4 * dim
    hidden_dim = int(2 * hidden_dim / 3)
    if ffn_dim_multiplier is not None:
        hidden_dim = int(ffn_dim_multiplier * hidden_dim)
    return multiple_of * ((hidden_dim + multiple_of - 1) // multiple_of)


def precompute_freqs(head_dim, end, theta):
    freqs = 1.0 / (theta ** (jnp.arange(0, head_dim, 2)[: head_dim // 2].astype(jnp.float32) / head_dim))
    t = jnp.arange(end, dtype=jnp.float32)
    freqs = jnp.outer(t, freqs)                          # (end, head_dim//2)
    return jnp.cos(freqs), jnp.sin(freqs)


# ----------------------------- host-side parameter prep -----------------------------

def _rotate_half_perm(n_heads, head_dim):
    # interleaved [e0,o0,e1,o1,...] -> rotate-half [e0,e1,...,o0,o1,...] per head.
    m = head_dim // 2
    perm = []
    for h in range(n_heads):
        base = h * head_dim
        perm.extend(base + 2 * np.arange(m))
        perm.extend(base + 2 * np.arange(m) + 1)
    return np.asarray(perm, np.int32)


def _pad2(x, rows, cols):
    return jnp.pad(x, ((0, rows - x.shape[0]), (0, cols - x.shape[1])))


def prepare_params(raw, args: ModelArgs, compute_dtype=jnp.bfloat16):
    """Permute (rotate-half), fuse (QKV, w1|w3), zero-pad to 128-lane widths, cast to bf16."""
    D = args.dim
    H = args.n_heads
    Hkv = args.n_heads if args.n_kv_heads is None else args.n_kv_heads
    Dh = D // H
    assert Dh % 2 == 0
    Hff = ffn_hidden_dim(D, args.multiple_of, args.ffn_dim_multiplier)
    D_pad = _round_up(D, LANE)
    Hff_pad = _round_up(Hff, LANE)
    V_pad = _round_up(args.vocab_size, LANE)

    perm_q = _rotate_half_perm(H, Dh)
    perm_k = _rotate_half_perm(Hkv, Dh)

    prep = {
        "tok_emb": jnp.pad(raw["tok_emb"], ((0, 0), (0, D_pad - D))),      # f32, padded lanes are exactly 0
        "final_norm": _pad2(raw["final_norm"].reshape(1, D), 1, D_pad),     # norms stay f32
        "w_out": _pad2(raw["w_out"], D_pad, V_pad).astype(compute_dtype),
        "freqs_cos": raw["freqs_cos"],
        "freqs_sin": raw["freqs_sin"],
        "layers": [],
    }
    for lp in raw["layers"]:
        wq = lp["wq"][:, perm_q]                  # rotate-half column order (scores invariant)
        wk = lp["wk"][:, perm_k]
        wqkv = jnp.concatenate([wq, wk, lp["wv"]], axis=1)                  # fused QKV projection
        w13 = jnp.concatenate([_pad2(lp["w1"], D, Hff_pad),
                               _pad2(lp["w3"], D, Hff_pad)], axis=1)        # fused gate/up projection
        prep["layers"].append({
            "attn_norm": _pad2(lp["attn_norm"].reshape(1, D), 1, D_pad),
            "ffn_norm": _pad2(lp["ffn_norm"].reshape(1, D), 1, D_pad),
            "wqkv": _pad2(wqkv, D_pad, wqkv.shape[1]).astype(compute_dtype),
            "w13": _pad2(w13, D_pad, w13.shape[1]).astype(compute_dtype),
            "w2": _pad2(lp["w2"], Hff_pad, D_pad).astype(compute_dtype),
            # NOTE: wo is intentionally NOT carried into the kernel params — the reference
            # forward never uses its result.
        })
    return prep


# ----------------------------- Pallas kernels -----------------------------

def _rms(x, w, inv_d, eps):
    # Padded lanes of x are kept exactly zero, so sum(x*x) equals the true-width sum;
    # divide by the TRUE feature width (not the padded one).
    ms = jnp.sum(x * x, axis=-1, keepdims=True) * inv_d
    return x * lax.rsqrt(ms + eps) * w


def _rotate_half(x, width):
    m = width // 2
    if width % (2 * LANE) == 0:
        # Lane-aligned half rotation -> XLU slot (free alongside MXU/VPU work).
        return pltpu.roll(x, shift=m, axis=-1)
    # Toy head_dim (<128): lane-unaligned; slice+concat (VPU/XLU shuffles, still no MXU pass).
    return jnp.concatenate([x[..., m:], x[..., :m]], axis=-1)


def _layer_kernel(x_ref, an_ref, wqkv_ref, cq_ref, sq_ref, ck_ref, sk_ref,
                  fn_ref, w13_ref, w2_ref, o_ref, *,
                  eps, batch, seqlen, n_heads, n_kv_heads, head_dim,
                  d_true, hff_pad, compute_dtype):
    """One full transformer block over the whole (B*S, D_pad) slab; everything stays in VMEM."""
    cd = compute_dtype
    inv_d = 1.0 / d_true
    B, S, Dh = batch, seqlen, head_dim
    H, Hkv = n_heads, n_kv_heads
    n_rep = H // Hkv
    QW, KW = H * Dh, Hkv * Dh

    x = x_ref[...]                                        # (B*S, D_pad) f32, padded lanes are zero
    M, D_pad = x.shape

    # ---- attention sub-block (fused) ----
    xn = _rms(x, an_ref[...], inv_d, eps)
    qkv = jnp.dot(xn.astype(cd), wqkv_ref[...],            # single fused QKV matmul, bf16 -> f32 acc
                  preferred_element_type=jnp.float32)
    q = qkv[:, :QW]
    k = qkv[:, QW:QW + KW]
    v = qkv[:, QW + KW:QW + 2 * KW]

    # causal mask built in-kernel (no HBM mask tensor); large-finite so masked rows can't NaN.
    row = lax.broadcasted_iota(jnp.int32, (S, S), 0)
    col = lax.broadcasted_iota(jnp.int32, (S, S), 1)
    causal = (col <= row)[None]                            # (1, S, S), broadcasts over batch

    cos_q, sin_q = cq_ref[...][None], sq_ref[...][None]    # (1, S, Dh); 1/sqrt(Dh) folded into q tables
    cos_k, sin_k = ck_ref[...][None], sk_ref[...][None]

    head_outs = []
    for g in range(Hkv):                                   # static loop over KV groups (GQA: no repeats)
        k_g = k[:, g * Dh:(g + 1) * Dh].reshape(B, S, Dh)
        v_g = v[:, g * Dh:(g + 1) * Dh].reshape(B, S, Dh).astype(cd)
        k_rot = (k_g * cos_k + _rotate_half(k_g, Dh) * sin_k).astype(cd)
        for r in range(n_rep):                             # query heads sharing this KV head
            h_idx = g * n_rep + r
            q_h = q[:, h_idx * Dh:(h_idx + 1) * Dh].reshape(B, S, Dh)
            q_rot = (q_h * cos_q + _rotate_half(q_h, Dh) * sin_q).astype(cd)
            # score/PV matmuls batched over the batch dim (3-D dot_general, leading batch).
            s = jnp.einsum('bqd,bkd->bqk', q_rot, k_rot,
                           preferred_element_type=jnp.float32)
            s = jnp.where(causal, s, -1e30)
            m = jnp.max(s, axis=-1, keepdims=True)
            p = jnp.exp(s - m)
            denom = jnp.sum(p, axis=-1, keepdims=True)     # f32 denominator
            p = p * pl.reciprocal(denom, approx=True)      # EUP slot, ~free
            head_outs.append(jnp.einsum('bqk,bkd->bqd', p.astype(cd), v_g,
                                        preferred_element_type=jnp.float32))
    attn = jnp.concatenate(head_outs, axis=-1).reshape(M, QW)
    # NOTE: reference forward returns the pre-`wo` per-head concat; wo is NOT applied.
    if D_pad > QW:
        attn = jnp.concatenate([attn, jnp.zeros((M, D_pad - QW), jnp.float32)], axis=-1)
    h_mid = x + attn

    # ---- SwiGLU feed-forward sub-block (fused) ----
    xn2 = _rms(h_mid, fn_ref[...], inv_d, eps)
    h13 = jnp.dot(xn2.astype(cd), w13_ref[...],            # fused w1|w3 matmul
                  preferred_element_type=jnp.float32)
    h1 = h13[:, :hff_pad]                                  # 128-lane aligned slices
    h3 = h13[:, hff_pad:]
    g13 = h1 * pl.reciprocal(1.0 + jnp.exp(-h1), approx=True) * h3   # SiLU(h1)*h3 in f32
    ff = jnp.dot(g13.astype(cd), w2_ref[...], preferred_element_type=jnp.float32)
    o_ref[...] = h_mid + ff                                # f32, lane-dense (D_pad) store


def transformer_layer(h2d, lp, rope, *, args: ModelArgs, batch, seqlen, hff_pad, compute_dtype):
    H = args.n_heads
    Hkv = args.n_heads if args.n_kv_heads is None else args.n_kv_heads
    Dh = args.dim // H
    cq, sq, ck, sk = rope

    kern = functools.partial(
        _layer_kernel, eps=args.norm_eps, batch=batch, seqlen=seqlen,
        n_heads=H, n_kv_heads=Hkv, head_dim=Dh, d_true=args.dim,
        hff_pad=hff_pad, compute_dtype=compute_dtype)

    # Gridless: the whole (B*S, D_pad) slab + bf16 layer weights fit VMEM at this size.
    # TODO(synk): at real LLaMA sizes, tile the weights with a reduction grid axis +
    # accumulator (pl.when init/finalize), add a 'parallel' batch/M-tile grid axis so both
    # v7x TensorCores get work, and mark grid-invariant weight inputs pl.Buffered(1).
    return pl.pallas_call(
        kern,
        out_shape=jax.ShapeDtypeStruct(h2d.shape, jnp.float32),
        compiler_params=pltpu.CompilerParams(vmem_limit_bytes=32 * 1024 * 1024),
    )(h2d, lp["attn_norm"], lp["wqkv"], cq, sq, ck, sk,
      lp["ffn_norm"], lp["w13"], lp["w2"])


def _final_kernel(x_ref, nw_ref, wo_ref, o_ref, *, eps, inv_d, compute_dtype):
    xn = _rms(x_ref[...], nw_ref[...], inv_d, eps)
    o_ref[...] = jnp.dot(xn.astype(compute_dtype), wo_ref[...],
                         preferred_element_type=jnp.float32)


def final_norm_and_logits(x2d, norm_w, w_out, *, eps, d_true, compute_dtype):
    M, D_pad = x2d.shape
    V_pad = w_out.shape[1]
    tm = M if M <= 256 else 256
    tn = min(V_pad, 512)                                   # multiple of 128 -> lane-dense stores
    grid = (pl.cdiv(M, tm), pl.cdiv(V_pad, tn))
    kern = functools.partial(_final_kernel, eps=eps, inv_d=1.0 / d_true,
                             compute_dtype=compute_dtype)
    return pl.pallas_call(
        kern,
        grid=grid,
        in_specs=[pl.BlockSpec((tm, D_pad), lambda i, j: (i, 0)),
                  pl.BlockSpec((1, D_pad), lambda i, j: (0, 0)),
                  pl.BlockSpec((D_pad, tn), lambda i, j: (0, j))],
        out_specs=pl.BlockSpec((tm, tn), lambda i, j: (i, j)),
        out_shape=jax.ShapeDtypeStruct((M, V_pad), jnp.float32),
        compiler_params=pltpu.CompilerParams(
            dimension_semantics=("parallel", "parallel"),
            vmem_limit_bytes=32 * 1024 * 1024),
    )(x2d, norm_w, w_out)


# ----------------------------- forward pass -----------------------------

def transformer_forward(prep, tokens, *, args: ModelArgs, start_pos: int = 0,
                        compute_dtype=jnp.bfloat16):
    B, S = tokens.shape
    D = args.dim
    H = args.n_heads
    Dh = D // H
    V = args.vocab_size
    hff_pad = prep["layers"][0]["w2"].shape[0]

    # token-embedding gather stays in plain JAX (XLA handles gathers well).
    h = jnp.take(prep["tok_emb"], tokens, axis=0)          # (B, S, D_pad) f32, padded lanes zero
    h2d = h.reshape(B * S, -1)

    # rotate-half RoPE tables; sign and the 1/sqrt(Dh) softmax scale folded in host-side.
    cos = prep["freqs_cos"][start_pos:start_pos + S]       # (S, Dh//2)
    sin = prep["freqs_sin"][start_pos:start_pos + S]
    cos_h = jnp.concatenate([cos, cos], axis=1)            # (S, Dh)
    sin_h = jnp.concatenate([-sin, sin], axis=1)           # signed for rotate-half
    scale = 1.0 / math.sqrt(Dh)
    rope = (cos_h * scale, sin_h * scale, cos_h, sin_h)    # (cos_q, sin_q, cos_k, sin_k)

    for lp in prep["layers"]:
        h2d = transformer_layer(h2d, lp, rope, args=args, batch=B, seqlen=S,
                                hff_pad=hff_pad, compute_dtype=compute_dtype)
        # TODO(synk): prefetch next-layer weights across pallas_calls (P10) at real sizes.

    logits_pad = final_norm_and_logits(h2d, prep["final_norm"], prep["w_out"],
                                       eps=args.norm_eps, d_true=D,
                                       compute_dtype=compute_dtype)
    return logits_pad[:, :V].reshape(B, S, V)              # slice padded vocab back to true V


# ----------------------------- pure-JAX reference (original torch math) -----------------------------

def _apply_rope_ref(x, cos, sin):
    B, S, H, Dh = x.shape
    xr = x.reshape(B, S, H, Dh // 2, 2)
    xe, xo = xr[..., 0], xr[..., 1]
    c = cos[None, :, None, :]
    s = sin[None, :, None, :]
    oe = xe * c - xo * s
    oo = xe * s + xo * c
    return jnp.stack([oe, oo], axis=-1).reshape(B, S, H, Dh)


def transformer_forward_ref(raw, tokens, *, args: ModelArgs, start_pos: int = 0,
                            matmul_dtype=jnp.float32):
    """Faithful reference of the torch forward (interleaved RoPE, un-permuted/un-padded weights,
    wo NOT applied).  `matmul_dtype=bf16` mirrors the kernel's MXU-input precision."""
    md = matmul_dtype
    B, S = tokens.shape
    D = args.dim
    H = args.n_heads
    Hkv = args.n_heads if args.n_kv_heads is None else args.n_kv_heads
    Dh = D // H
    n_rep = H // Hkv
    eps = args.norm_eps

    def mm(a, b):
        return jnp.dot(a.astype(md), b.astype(md), preferred_element_type=jnp.float32)

    def rms(x, w):
        return x * lax.rsqrt(jnp.mean(x * x, -1, keepdims=True) + eps) * w

    h = jnp.take(raw["tok_emb"], tokens, axis=0)
    cos = raw["freqs_cos"][start_pos:start_pos + S]
    sin = raw["freqs_sin"][start_pos:start_pos + S]
    mask = jnp.triu(jnp.full((S, S), float("-inf"), jnp.float32), k=1)
    scale = 1.0 / math.sqrt(Dh)

    for lp in raw["layers"]:
        xn = rms(h, lp["attn_norm"]).reshape(B * S, D)
        xq = mm(xn, lp["wq"]).reshape(B, S, H, Dh)
        xk = mm(xn, lp["wk"]).reshape(B, S, Hkv, Dh)
        xv = mm(xn, lp["wv"]).reshape(B, S, Hkv, Dh)
        xq = _apply_rope_ref(xq, cos, sin)
        xk = _apply_rope_ref(xk, cos, sin)
        keys = jnp.repeat(xk, n_rep, axis=2)
        vals = jnp.repeat(xv, n_rep, axis=2)
        qh, kh, vh = (t.transpose(0, 2, 1, 3) for t in (xq, keys, vals))
        sc = jnp.einsum("bhqd,bhkd->bhqk", qh.astype(md), kh.astype(md),
                        preferred_element_type=jnp.float32) * scale + mask
        p = jax.nn.softmax(sc, axis=-1)
        out = jnp.einsum("bhqk,bhkd->bhqd", p.astype(md), vh.astype(md),
                         preferred_element_type=jnp.float32)
        h = h + out.transpose(0, 2, 1, 3).reshape(B, S, D)     # wo intentionally NOT applied
        xn2 = rms(h, lp["ffn_norm"]).reshape(B * S, D)
        h1 = mm(xn2, lp["w1"])
        h3 = mm(xn2, lp["w3"])
        h = h + mm(jax.nn.silu(h1) * h3, lp["w2"]).reshape(B, S, D)

    hn = rms(h, raw["final_norm"]).reshape(B * S, D)
    return mm(hn, raw["w_out"]).reshape(B, S, -1)


# ----------------------------- parameter init -----------------------------

def init_params(key, args: ModelArgs):
    D = args.dim
    H = args.n_heads
    Hkv = args.n_heads if args.n_kv_heads is None else args.n_kv_heads
    Dh = D // H
    Hff = ffn_hidden_dim(D, args.multiple_of, args.ffn_dim_multiplier)

    def nrm(k, shape):
        return 0.02 * jax.random.normal(k, shape, dtype=jnp.float32)

    keys = jax.random.split(key, 2 + 7 * args.n_layers)
    ki = iter(keys)
    params = {
        "tok_emb": nrm(next(ki), (args.vocab_size, D)),
        "w_out": nrm(next(ki), (D, args.vocab_size)),
        "final_norm": jnp.ones((D,), jnp.float32),
        "layers": [],
    }
    cos, sin = precompute_freqs(Dh, args.max_seq_len * 2, args.rope_theta)
    params["freqs_cos"] = cos
    params["freqs_sin"] = sin
    for _ in range(args.n_layers):
        params["layers"].append({
            "wq": nrm(next(ki), (D, H * Dh)),
            "wk": nrm(next(ki), (D, Hkv * Dh)),
            "wv": nrm(next(ki), (D, Hkv * Dh)),
            "wo": nrm(next(ki), (H * Dh, D)),   # parity with reference param set; unused in forward
            "w1": nrm(next(ki), (D, Hff)),
            "w2": nrm(next(ki), (Hff, D)),
            "w3": nrm(next(ki), (D, Hff)),
            "attn_norm": jnp.ones((D,), jnp.float32),
            "ffn_norm": jnp.ones((D,), jnp.float32),
        })
    return params


# ----------------------------- main -----------------------------

if __name__ == "__main__":
    args = ModelArgs(dim=32, n_layers=2, n_heads=4, n_kv_heads=2, vocab_size=64,
                     multiple_of=16, norm_eps=1e-5, rope_theta=500000.0,
                     max_batch_size=4, max_seq_len=16)

    raw = init_params(jax.random.PRNGKey(0), args)
    prep = prepare_params(raw, args, compute_dtype=jnp.bfloat16)
    tokens = jax.random.randint(jax.random.PRNGKey(1), (2, 8), 0, args.vocab_size,
                                dtype=jnp.int32)

    fwd = jax.jit(functools.partial(transformer_forward, args=args, start_pos=0,
                                    compute_dtype=jnp.bfloat16))
    logits = fwd(prep, tokens)
    jax.block_until_ready(logits)

    assert logits.shape == (2, 8, args.vocab_size), logits.shape
    assert logits.dtype == jnp.float32
    assert bool(jnp.all(jnp.isfinite(logits)))

    # Precision-matched reference (same bf16 MXU inputs / f32 accumulation, original layout & math).
    ref_bf16 = jax.jit(functools.partial(transformer_forward_ref, args=args, start_pos=0,
                                         matmul_dtype=jnp.bfloat16))(raw, tokens)
    jax.block_until_ready(ref_bf16)
    err_bf16 = float(jnp.max(jnp.abs(logits - ref_bf16)))
    assert bool(jnp.allclose(logits, ref_bf16, atol=5e-3, rtol=2e-2)), err_bf16

    # Full-f32 reference of the original module: loose sanity check that bf16 weights stay close.
    ref_f32 = jax.jit(functools.partial(transformer_forward_ref, args=args, start_pos=0,
                                        matmul_dtype=jnp.float32))(raw, tokens)
    jax.block_until_ready(ref_f32)
    err_f32 = float(jnp.max(jnp.abs(logits - ref_f32)))
    assert bool(jnp.allclose(logits, ref_f32, atol=5e-2, rtol=5e-2)), err_f32

    print("KERNEL_OK")
</pallas_src>

<mosaic_0001>
module attributes {stable_mosaic.version = 11 : i64} {
  func.func @_final_kernel(%arg0: i32, %arg1: i32, %arg2: memref<16x128xf32, #tpu.memory_space<vmem>>, %arg3: memref<1x128xf32, #tpu.memory_space<vmem>>, %arg4: memref<128x128xbf16, #tpu.memory_space<vmem>>, %arg5: memref<16x128xf32, #tpu.memory_space<vmem>>) attributes {dimension_semantics = [#tpu.dimension_semantics<parallel>, #tpu.dimension_semantics<parallel>], iteration_bounds = array<i64: 1, 1>, scalar_prefetch = 0 : i64, scratch_operands = 0 : i64, tpu.core_type = #tpu.core_type<tc>, window_params = [{transform_indices = @transform_0, window_bounds = array<i64: 16, 128>}, {pipeline_mode = #tpu.pipeline_mode<synchronous>, transform_indices = @transform_1, window_bounds = array<i64: 1, 128>}, {transform_indices = @transform_2, window_bounds = array<i64: 128, 128>}, {transform_indices = @transform_3, window_bounds = array<i64: 16, 128>}]} {
    %c0 = arith.constant 0 : index
    %c0_0 = arith.constant 0 : index
    %0 = vector.load %arg2[%c0, %c0_0] : memref<16x128xf32, #tpu.memory_space<vmem>>, vector<16x128xf32>
    %c0_1 = arith.constant 0 : index
    %c0_2 = arith.constant 0 : index
    %1 = vector.load %arg3[%c0_1, %c0_2] : memref<1x128xf32, #tpu.memory_space<vmem>>, vector<1x128xf32>
    %2 = arith.mulf %0, %0 : vector<16x128xf32>
    %cst = arith.constant dense<0.000000e+00> : vector<16xf32>
    %3 = vector.multi_reduction <add>, %2, %cst [1] : vector<16x128xf32> to vector<16xf32>
    %4 = vector.shape_cast %3 : vector<16xf32> to vector<16x1xf32>
    %cst_3 = arith.constant 3.125000e-02 : f32
    %5 = vector.broadcast %cst_3 : f32 to vector<16x1xf32>
    %6 = arith.mulf %4, %5 : vector<16x1xf32>
    %cst_4 = arith.constant 9.99999974E-6 : f32
    %7 = vector.broadcast %cst_4 : f32 to vector<16x1xf32>
    %8 = arith.addf %6, %7 : vector<16x1xf32>
    %9 = math.rsqrt %8 : vector<16x1xf32>
    %10 = vector.broadcast %9 : vector<16x1xf32> to vector<16x128xf32>
    %11 = arith.mulf %0, %10 : vector<16x128xf32>
    %12 = vector.broadcast %1 : vector<1x128xf32> to vector<16x128xf32>
    %13 = arith.mulf %11, %12 : vector<16x128xf32>
    %14 = arith.truncf %13 : vector<16x128xf32> to vector<16x128xbf16>
    %c0_5 = arith.constant 0 : index
    %c0_6 = arith.constant 0 : index
    %15 = vector.load %arg4[%c0_5, %c0_6] : memref<128x128xbf16, #tpu.memory_space<vmem>>, vector<128x128xbf16>
    %cst_7 = arith.constant dense<0.000000e+00> : vector<16x128xf32>
    %16 = tpu.matmul %14, %15, %cst_7 {dimension_numbers = #tpu.dot_dimension_numbers<[1], [0], [0], [1], [0, 0, 1, 1], [], []>} : vector<16x128xbf16>, vector<128x128xbf16>, vector<16x128xf32> -> vector<16x128xf32>
    %c0_8 = arith.constant 0 : index
    %c0_9 = arith.constant 0 : index
    %17 = vector.load %arg5[%c0_8, %c0_9] : memref<16x128xf32, #tpu.memory_space<vmem>>, vector<16x128xf32>
    tpu.vector_store %arg5[%c0_8, %c0_9], %16 {strides = array<i32>} : memref<16x128xf32, #tpu.memory_space<vmem>>, vector<16x128xf32>,
    return
  }
  func.func @transform_0(%arg0: i32, %arg1: i32) -> (i32, i32) {
    %c0_i32 = arith.constant 0 : i32
    %c0_i32_0 = arith.constant 0 : i32
    return %arg0, %c0_i32 : i32, i32
  }
  func.func @transform_1(%arg0: i32, %arg1: i32) -> (i32, i32) {
    %c0_i32 = arith.constant 0 : i32
    %c0_i32_0 = arith.constant 0 : i32
    %c0_i32_1 = arith.constant 0 : i32
    return %c0_i32, %c0_i32_0 : i32, i32
  }
  func.func @transform_2(%arg0: i32, %arg1: i32) -> (i32, i32) {
    %c0_i32 = arith.constant 0 : i32
    %c0_i32_0 = arith.constant 0 : i32
    return %c0_i32, %arg1 : i32, i32
  }
  func.func @transform_3(%arg0: i32, %arg1: i32) -> (i32, i32) {
    %c0_i32 = arith.constant 0 : i32
    return %arg0, %arg1 : i32, i32
  }
}

module attributes {stable_mosaic.version = 11 : i64} {
  func.func @_layer_kernel(%arg0: memref<16x128xf32, #tpu.memory_space<vmem>>, %arg1: memref<1x128xf32, #tpu.memory_space<vmem>>, %arg2: memref<128x64xbf16, #tpu.memory_space<vmem>>, %arg3: memref<8x8xf32, #tpu.memory_space<vmem>>, %arg4: memref<8x8xf32, #tpu.memory_space<vmem>>, %arg5: memref<8x8xf32, #tpu.memory_space<vmem>>, %arg6: memref<8x8xf32, #tpu.memory_space<vmem>>, %arg7: memref<1x128xf32, #tpu.memory_space<vmem>>, %arg8: memref<128x256xbf16, #tpu.memory_space<vmem>>, %arg9: memref<128x128xbf16, #tpu.memory_space<vmem>>, %arg10: memref<16x128xf32, #tpu.memory_space<vmem>>) attributes {dimension_semantics = [], scalar_prefetch = 0 : i64, scratch_operands = 0 : i64, tpu.core_type = #tpu.core_type<tc>} {
    %c0 = arith.constant 0 : index
    %c0_0 = arith.constant 0 : index
    %0 = vector.load %arg0[%c0, %c0_0] : memref<16x128xf32, #tpu.memory_space<vmem>>, vector<16x128xf32>
    %c0_1 = arith.constant 0 : index
    %c0_2 = arith.constant 0 : index
    %1 = vector.load %arg1[%c0_1, %c0_2] : memref<1x128xf32, #tpu.memory_space<vmem>>, vector<1x128xf32>
    %2 = arith.mulf %0, %0 : vector<16x128xf32>
    %cst = arith.constant dense<0.000000e+00> : vector<16xf32>
    %3 = vector.multi_reduction <add>, %2, %cst [1] : vector<16x128xf32> to vector<16xf32>
    %4 = vector.shape_cast %3 : vector<16xf32> to vector<16x1xf32>
    %cst_3 = arith.constant 3.125000e-02 : f32
    %5 = vector.broadcast %cst_3 : f32 to vector<16x1xf32>
    %6 = arith.mulf %4, %5 : vector<16x1xf32>
    %cst_4 = arith.constant 9.99999974E-6 : f32
    %7 = vector.broadcast %cst_4 : f32 to vector<16x1xf32>
    %8 = arith.addf %6, %7 : vector<16x1xf32>
    %9 = math.rsqrt %8 : vector<16x1xf32>
    %10 = vector.broadcast %9 : vector<16x1xf32> to vector<16x128xf32>
    %11 = arith.mulf %0, %10 : vector<16x128xf32>
    %12 = vector.broadcast %1 : vector<1x128xf32> to vector<16x128xf32>
    %13 = arith.mulf %11, %12 : vector<16x128xf32>
    %14 = arith.truncf %13 : vector<16x128xf32> to vector<16x128xbf16>
    %c0_5 = arith.constant 0 : index
    %c0_6 = arith.constant 0 : index
    %15 = vector.load %arg2[%c0_5, %c0_6] : memref<128x64xbf16, #tpu.memory_space<vmem>>, vector<128x64xbf16>
    %cst_7 = arith.constant dense<0.000000e+00> : vector<16x64xf32>
    %16 = tpu.matmul %14, %15, %cst_7 {dimension_numbers = #tpu.dot_dimension_numbers<[1], [0], [0], [1], [0, 0, 1, 1], [], []>} : vector<16x128xbf16>, vector<128x64xbf16>, vector<16x64xf32> -> vector<16x64xf32>
    %17 = vector.extract_strided_slice %16 {offsets = [0, 0], sizes = [16, 32], strides = [1, 1]} : vector<16x64xf32> to vector<16x32xf32>
    %18 = vector.extract_strided_slice %16 {offsets = [0, 32], sizes = [16, 16], strides = [1, 1]} : vector<16x64xf32> to vector<16x16xf32>
    %19 = vector.extract_strided_slice %16 {offsets = [0, 48], sizes = [16, 16], strides = [1, 1]} : vector<16x64xf32> to vector<16x16xf32>
    %20 = tpu.iota {dimensions = array<i32: 0>} : vector<8x8xi32>
    %21 = tpu.iota {dimensions = array<i32: 1>} : vector<8x8xi32>
    %22 = arith.cmpi sle, %21, %20 : vector<8x8xi32>
    %23 = vector.shape_cast %22 : vector<8x8xi1> to vector<1x8x8xi1>
    %c0_8 = arith.constant 0 : index
    %c0_9 = arith.constant 0 : index
    %24 = vector.load %arg3[%c0_8, %c0_9] : memref<8x8xf32, #tpu.memory_space<vmem>>, vector<8x8xf32>
    %25 = vector.shape_cast %24 : vector<8x8xf32> to vector<1x8x8xf32>
    %c0_10 = arith.constant 0 : index
    %c0_11 = arith.constant 0 : index
    %26 = vector.load %arg4[%c0_10, %c0_11] : memref<8x8xf32, #tpu.memory_space<vmem>>, vector<8x8xf32>
    %27 = vector.shape_cast %26 : vector<8x8xf32> to vector<1x8x8xf32>
    %c0_12 = arith.constant 0 : index
    %c0_13 = arith.constant 0 : index
    %28 = vector.load %arg5[%c0_12, %c0_13] : memref<8x8xf32, #tpu.memory_space<vmem>>, vector<8x8xf32>
    %29 = vector.shape_cast %28 : vector<8x8xf32> to vector<1x8x8xf32>
    %c0_14 = arith.constant 0 : index
    %c0_15 = arith.constant 0 : index
    %30 = vector.load %arg6[%c0_14, %c0_15] : memref<8x8xf32, #tpu.memory_space<vmem>>, vector<8x8xf32>
    %31 = vector.shape_cast %30 : vector<8x8xf32> to vector<1x8x8xf32>
    %32 = vector.extract_strided_slice %18 {offsets = [0, 0], sizes = [16, 8], strides = [1, 1]} : vector<16x16xf32> to vector<16x8xf32>
    %33 = vector.shape_cast %32 : vector<16x8xf32> to vector<2x8x8xf32>
    %34 = vector.extract_strided_slice %19 {offsets = [0, 0], sizes = [16, 8], strides = [1, 1]} : vector<16x16xf32> to vector<16x8xf32>
    %35 = vector.shape_cast %34 : vector<16x8xf32> to vector<2x8x8xf32>
    %36 = arith.truncf %35 : vector<2x8x8xf32> to vector<2x8x8xbf16>
    %37 = vector.broadcast %29 : vector<1x8x8xf32> to vector<2x8x8xf32>
    %38 = arith.mulf %33, %37 : vector<2x8x8xf32>
    %39 = vector.extract_strided_slice %33 {offsets = [0, 0, 4], sizes = [2, 8, 4], strides = [1, 1, 1]} : vector<2x8x8xf32> to vector<2x8x4xf32>
    %40 = vector.extract_strided_slice %33 {offsets = [0, 0, 0], sizes = [2, 8, 4], strides = [1, 1, 1]} : vector<2x8x8xf32> to vector<2x8x4xf32>
    %41 = tpu.concatenate %39, %40 in 2 : vector<2x8x4xf32>, vector<2x8x4xf32> -> vector<2x8x8xf32>
    %42 = vector.broadcast %31 : vector<1x8x8xf32> to vector<2x8x8xf32>
    %43 = arith.mulf %41, %42 : vector<2x8x8xf32>
    %44 = arith.addf %38, %43 : vector<2x8x8xf32>
    %45 = arith.truncf %44 : vector<2x8x8xf32> to vector<2x8x8xbf16>
    %46 = vector.extract_strided_slice %17 {offsets = [0, 0], sizes = [16, 8], strides = [1, 1]} : vector<16x32xf32> to vector<16x8xf32>
    %47 = vector.shape_cast %46 : vector<16x8xf32> to vector<2x8x8xf32>
    %48 = vector.broadcast %25 : vector<1x8x8xf32> to vector<2x8x8xf32>
    %49 = arith.mulf %47, %48 : vector<2x8x8xf32>
    %50 = vector.extract_strided_slice %47 {offsets = [0, 0, 4], sizes = [2, 8, 4], strides = [1, 1, 1]} : vector<2x8x8xf32> to vector<2x8x4xf32>
    %51 = vector.extract_strided_slice %47 {offsets = [0, 0, 0], sizes = [2, 8, 4], strides = [1, 1, 1]} : vector<2x8x8xf32> to vector<2x8x4xf32>
    %52 = tpu.concatenate %50, %51 in 2 : vector<2x8x4xf32>, vector<2x8x4xf32> -> vector<2x8x8xf32>
    %53 = vector.broadcast %27 : vector<1x8x8xf32> to vector<2x8x8xf32>
    %54 = arith.mulf %52, %53 : vector<2x8x8xf32>
    %55 = arith.addf %49, %54 : vector<2x8x8xf32>
    %56 = arith.truncf %55 : vector<2x8x8xf32> to vector<2x8x8xbf16>
    "tpu.trace_start"() <{level = 10 : i32, message = "bqd,bkd->bqk"}> : () -> ()
    %cst_16 = arith.constant dense<0.000000e+00> : vector<2x8x8xf32>
    %57 = tpu.matmul %56, %45, %cst_16 {dimension_numbers = #tpu.dot_dimension_numbers<[2], [2], [1], [1], [0, 0, 0, 1, 1, 1], [0], [0]>} : vector<2x8x8xbf16>, vector<2x8x8xbf16>, vector<2x8x8xf32> -> vector<2x8x8xf32>
    %cst_17 = arith.constant -1.000000e+30 : f32
    "tpu.trace_stop"() : () -> ()
    %58 = vector.shape_cast %23 : vector<1x8x8xi1> to vector<1x8x8xi1>
    %59 = vector.broadcast %58 : vector<1x8x8xi1> to vector<2x8x8xi1>
    %60 = vector.broadcast %cst_17 : f32 to vector<2x8x8xf32>
    %61 = arith.select %59, %57, %60 : vector<2x8x8xi1>, vector<2x8x8xf32>
    %cst_18 = arith.constant dense<0xFF800000> : vector<2x8xf32>
    %62 = vector.multi_reduction <maximumf>, %61, %cst_18 [2] : vector<2x8x8xf32> to vector<2x8xf32>
    %63 = vector.shape_cast %62 : vector<2x8xf32> to vector<2x8x1xf32>
    %64 = vector.broadcast %63 : vector<2x8x1xf32> to vector<2x8x8xf32>
    %65 = arith.subf %61, %64 : vector<2x8x8xf32>
    %66 = math.exp %65 : vector<2x8x8xf32>
    %cst_19 = arith.constant dense<0.000000e+00> : vector<2x8xf32>
    %67 = vector.multi_reduction <add>, %66, %cst_19 [2] : vector<2x8x8xf32> to vector<2x8xf32>
    %68 = vector.shape_cast %67 : vector<2x8xf32> to vector<2x8x1xf32>
    %69 = tpu.reciprocal %68 {approx = true} : vector<2x8x1xf32> -> vector<2x8x1xf32>
    %70 = vector.broadcast %69 : vector<2x8x1xf32> to vector<2x8x8xf32>
    %71 = arith.mulf %66, %70 : vector<2x8x8xf32>
    %72 = arith.truncf %71 : vector<2x8x8xf32> to vector<2x8x8xbf16>
    "tpu.trace_start"() <{level = 10 : i32, message = "bqk,bkd->bqd"}> : () -> ()
    %cst_20 = arith.constant dense<0.000000e+00> : vector<2x8x8xf32>
    %73 = tpu.matmul %72, %36, %cst_20 {dimension_numbers = #tpu.dot_dimension_numbers<[2], [1], [1], [2], [0, 0, 0, 1, 1, 2], [0], [0]>} : vector<2x8x8xbf16>, vector<2x8x8xbf16>, vector<2x8x8xf32> -> vector<2x8x8xf32>
    "tpu.trace_stop"() : () -> ()
    %74 = vector.extract_strided_slice %17 {offsets = [0, 8], sizes = [16, 8], strides = [1, 1]} : vector<16x32xf32> to vector<16x8xf32>
    %75 = vector.shape_cast %74 : vector<16x8xf32> to vector<2x8x8xf32>
    %76 = vector.broadcast %25 : vector<1x8x8xf32> to vector<2x8x8xf32>
    %77 = arith.mulf %75, %76 : vector<2x8x8xf32>
    %78 = vector.extract_strided_slice %75 {offsets = [0, 0, 4], sizes = [2, 8, 4], strides = [1, 1, 1]} : vector<2x8x8xf32> to vector<2x8x4xf32>
    %79 = vector.extract_strided_slice %75 {offsets = [0, 0, 0], sizes = [2, 8, 4], strides = [1, 1, 1]} : vector<2x8x8xf32> to vector<2x8x4xf32>
    %80 = tpu.concatenate %78, %79 in 2 : vector<2x8x4xf32>, vector<2x8x4xf32> -> vector<2x8x8xf32>
    %81 = vector.broadcast %27 : vector<1x8x8xf32> to vector<2x8x8xf32>
    %82 = arith.mulf %80, %81 : vector<2x8x8xf32>
    %83 = arith.addf %77, %82 : vector<2x8x8xf32>
    %84 = arith.truncf %83 : vector<2x8x8xf32> to vector<2x8x8xbf16>
    "tpu.trace_start"() <{level = 10 : i32, message = "bqd,bkd->bqk"}> : () -> ()
    %cst_21 = arith.constant dense<0.000000e+00> : vector<2x8x8xf32>
    %85 = tpu.matmul %84, %45, %cst_21 {dimension_numbers = #tpu.dot_dimension_numbers<[2], [2], [1], [1], [0, 0, 0, 1, 1, 1], [0], [0]>} : vector<2x8x8xbf16>, vector<2x8x8xbf16>, vector<2x8x8xf32> -> vector<2x8x8xf32>
    %cst_22 = arith.constant -1.000000e+30 : f32
    "tpu.trace_stop"() : () -> ()
    %86 = vector.shape_cast %23 : vector<1x8x8xi1> to vector<1x8x8xi1>
    %87 = vector.broadcast %86 : vector<1x8x8xi1> to vector<2x8x8xi1>
    %88 = vector.broadcast %cst_22 : f32 to vector<2x8x8xf32>
    %89 = arith.select %87, %85, %88 : vector<2x8x8xi1>, vector<2x8x8xf32>
    %cst_23 = arith.constant dense<0xFF800000> : vector<2x8xf32>
    %90 = vector.multi_reduction <maximumf>, %89, %cst_23 [2] : vector<2x8x8xf32> to vector<2x8xf32>
    %91 = vector.shape_cast %90 : vector<2x8xf32> to vector<2x8x1xf32>
    %92 = vector.broadcast %91 : vector<2x8x1xf32> to vector<2x8x8xf32>
    %93 = arith.subf %89, %92 : vector<2x8x8xf32>
    %94 = math.exp %93 : vector<2x8x8xf32>
    %cst_24 = arith.constant dense<0.000000e+00> : vector<2x8xf32>
    %95 = vector.multi_reduction <add>, %94, %cst_24 [2] : vector<2x8x8xf32> to vector<2x8xf32>
    %96 = vector.shape_cast %95 : vector<2x8xf32> to vector<2x8x1xf32>
    %97 = tpu.reciprocal %96 {approx = true} : vector<2x8x1xf32> -> vector<2x8x1xf32>
    %98 = vector.broadcast %97 : vector<2x8x1xf32> to vector<2x8x8xf32>
    %99 = arith.mulf %94, %98 : vector<2x8x8xf32>
    %100 = arith.truncf %99 : vector<2x8x8xf32> to vector<2x8x8xbf16>
    "tpu.trace_start"() <{level = 10 : i32, message = "bqk,bkd->bqd"}> : () -> ()
    %cst_25 = arith.constant dense<0.000000e+00> : vector<2x8x8xf32>
    %101 = tpu.matmul %100, %36, %cst_25 {dimension_numbers = #tpu.dot_dimension_numbers<[2], [1], [1], [2], [0, 0, 0, 1, 1, 2], [0], [0]>} : vector<2x8x8xbf16>, vector<2x8x8xbf16>, vector<2x8x8xf32> -> vector<2x8x8xf32>
    "tpu.trace_stop"() : () -> ()
    %102 = vector.extract_strided_slice %18 {offsets = [0, 8], sizes = [16, 8], strides = [1, 1]} : vector<16x16xf32> to vector<16x8xf32>
    %103 = vector.shape_cast %102 : vector<16x8xf32> to vector<2x8x8xf32>
    %104 = vector.extract_strided_slice %19 {offsets = [0, 8], sizes = [16, 8], strides = [1, 1]} : vector<16x16xf32> to vector<16x8xf32>
    %105 = vector.shape_cast %104 : vector<16x8xf32> to vector<2x8x8xf32>
    %106 = arith.truncf %105 : vector<2x8x8xf32> to vector<2x8x8xbf16>
    %107 = vector.broadcast %29 : vector<1x8x8xf32> to vector<2x8x8xf32>
    %108 = arith.mulf %103, %107 : vector<2x8x8xf32>
    %109 = vector.extract_strided_slice %103 {offsets = [0, 0, 4], sizes = [2, 8, 4], strides = [1, 1, 1]} : vector<2x8x8xf32> to vector<2x8x4xf32>
    %110 = vector.extract_strided_slice %103 {offsets = [0, 0, 0], sizes = [2, 8, 4], strides = [1, 1, 1]} : vector<2x8x8xf32> to vector<2x8x4xf32>
    %111 = tpu.concatenate %109, %110 in 2 : vector<2x8x4xf32>, vector<2x8x4xf32> -> vector<2x8x8xf32>
    %112 = vector.broadcast %31 : vector<1x8x8xf32> to vector<2x8x8xf32>
    %113 = arith.mulf %111, %112 : vector<2x8x8xf32>
    %114 = arith.addf %108, %113 : vector<2x8x8xf32>
    %115 = arith.truncf %114 : vector<2x8x8xf32> to vector<2x8x8xbf16>
    %116 = vector.extract_strided_slice %17 {offsets = [0, 16], sizes = [16, 8], strides = [1, 1]} : vector<16x32xf32> to vector<16x8xf32>
    %117 = vector.shape_cast %116 : vector<16x8xf32> to vector<2x8x8xf32>
    %118 = vector.broadcast %25 : vector<1x8x8xf32> to vector<2x8x8xf32>
    %119 = arith.mulf %117, %118 : vector<2x8x8xf32>
    %120 = vector.extract_strided_slice %117 {offsets = [0, 0, 4], sizes = [2, 8, 4], strides = [1, 1, 1]} : vector<2x8x8xf32> to vector<2x8x4xf32>
    %121 = vector.extract_strided_slice %117 {offsets = [0, 0, 0], sizes = [2, 8, 4], strides = [1, 1, 1]} : vector<2x8x8xf32> to vector<2x8x4xf32>
    %122 = tpu.concatenate %120, %121 in 2 : vector<2x8x4xf32>, vector<2x8x4xf32> -> vector<2x8x8xf32>
    %123 = vector.broadcast %27 : vector<1x8x8xf32> to vector<2x8x8xf32>
    %124 = arith.mulf %122, %123 : vector<2x8x8xf32>
    %125 = arith.addf %119, %124 : vector<2x8x8xf32>
    %126 = arith.truncf %125 : vector<2x8x8xf32> to vector<2x8x8xbf16>
    "tpu.trace_start"() <{level = 10 : i32, message = "bqd,bkd->bqk"}> : () -> ()
    %cst_26 = arith.constant dense<0.000000e+00> : vector<2x8x8xf32>
    %127 = tpu.matmul %126, %115, %cst_26 {dimension_numbers = #tpu.dot_dimension_numbers<[2], [2], [1], [1], [0, 0, 0, 1, 1, 1], [0], [0]>} : vector<2x8x8xbf16>, vector<2x8x8xbf16>, vector<2x8x8xf32> -> vector<2x8x8xf32>
    %cst_27 = arith.constant -1.000000e+30 : f32
    "tpu.trace_stop"() : () -> ()
    %128 = vector.shape_cast %23 : vector<1x8x8xi1> to vector<1x8x8xi1>
    %129 = vector.broadcast %128 : vector<1x8x8xi1> to vector<2x8x8xi1>
    %130 = vector.broadcast %cst_27 : f32 to vector<2x8x8xf32>
    %131 = arith.select %129, %127, %130 : vector<2x8x8xi1>, vector<2x8x8xf32>
    %cst_28 = arith.constant dense<0xFF800000> : vector<2x8xf32>
    %132 = vector.multi_reduction <maximumf>, %131, %cst_28 [2] : vector<2x8x8xf32> to vector<2x8xf32>
    %133 = vector.shape_cast %132 : vector<2x8xf32> to vector<2x8x1xf32>
    %134 = vector.broadcast %133 : vector<2x8x1xf32> to vector<2x8x8xf32>
    %135 = arith.subf %131, %134 : vector<2x8x8xf32>
    %136 = math.exp %135 : vector<2x8x8xf32>
    %cst_29 = arith.constant dense<0.000000e+00> : vector<2x8xf32>
    %137 = vector.multi_reduction <add>, %136, %cst_29 [2] : vector<2x8x8xf32> to vector<2x8xf32>
    %138 = vector.shape_cast %137 : vector<2x8xf32> to vector<2x8x1xf32>
    %139 = tpu.reciprocal %138 {approx = true} : vector<2x8x1xf32> -> vector<2x8x1xf32>
    %140 = vector.broadcast %139 : vector<2x8x1xf32> to vector<2x8x8xf32>
    %141 = arith.mulf %136, %140 : vector<2x8x8xf32>
    %142 = arith.truncf %141 : vector<2x8x8xf32> to vector<2x8x8xbf16>
    "tpu.trace_start"() <{level = 10 : i32, message = "bqk,bkd->bqd"}> : () -> ()
    %cst_30 = arith.constant dense<0.000000e+00> : vector<2x8x8xf32>
    %143 = tpu.matmul %142, %106, %cst_30 {dimension_numbers = #tpu.dot_dimension_numbers<[2], [1], [1], [2], [0, 0, 0, 1, 1, 2], [0], [0]>} : vector<2x8x8xbf16>, vector<2x8x8xbf16>, vector<2x8x8xf32> -> vector<2x8x8xf32>
    "tpu.trace_stop"() : () -> ()
    %144 = vector.extract_strided_slice %17 {offsets = [0, 24], sizes = [16, 8], strides = [1, 1]} : vector<16x32xf32> to vector<16x8xf32>
    %145 = vector.shape_cast %144 : vector<16x8xf32> to vector<2x8x8xf32>
    %146 = vector.broadcast %25 : vector<1x8x8xf32> to vector<2x8x8xf32>
    %147 = arith.mulf %145, %146 : vector<2x8x8xf32>
    %148 = vector.extract_strided_slice %145 {offsets = [0, 0, 4], sizes = [2, 8, 4], strides = [1, 1, 1]} : vector<2x8x8xf32> to vector<2x8x4xf32>
    %149 = vector.extract_strided_slice %145 {offsets = [0, 0, 0], sizes = [2, 8, 4], strides = [1, 1, 1]} : vector<2x8x8xf32> to vector<2x8x4xf32>
    %150 = tpu.concatenate %148, %149 in 2 : vector<2x8x4xf32>, vector<2x8x4xf32> -> vector<2x8x8xf32>
    %151 = vector.broadcast %27 : vector<1x8x8xf32> to vector<2x8x8xf32>
    %152 = arith.mulf %150, %151 : vector<2x8x8xf32>
    %153 = arith.addf %147, %152 : vector<2x8x8xf32>
    %154 = arith.truncf %153 : vector<2x8x8xf32> to vector<2x8x8xbf16>
    "tpu.trace_start"() <{level = 10 : i32, message = "bqd,bkd->bqk"}> : () -> ()
    %cst_31 = arith.constant dense<0.000000e+00> : vector<2x8x8xf32>
    %155 = tpu.matmul %154, %115, %cst_31 {dimension_numbers = #tpu.dot_dimension_numbers<[2], [2], [1], [1], [0, 0, 0, 1, 1, 1], [0], [0]>} : vector<2x8x8xbf16>, vector<2x8x8xbf16>, vector<2x8x8xf32> -> vector<2x8x8xf32>
    %cst_32 = arith.constant -1.000000e+30 : f32
    "tpu.trace_stop"() : () -> ()
    %156 = vector.shape_cast %23 : vector<1x8x8xi1> to vector<1x8x8xi1>
    %157 = vector.broadcast %156 : vector<1x8x8xi1> to vector<2x8x8xi1>
    %158 = vector.broadcast %cst_32 : f32 to vector<2x8x8xf32>
    %159 = arith.select %157, %155, %158 : vector<2x8x8xi1>, vector<2x8x8xf32>
    %cst_33 = arith.constant dense<0xFF800000> : vector<2x8xf32>
    %160 = vector.multi_reduction <maximumf>, %159, %cst_33 [2] : vector<2x8x8xf32> to vector<2x8xf32>
    %161 = vector.shape_cast %160 : vector<2x8xf32> to vector<2x8x1xf32>
    %162 = vector.broadcast %161 : vector<2x8x1xf32> to vector<2x8x8xf32>
    %163 = arith.subf %159, %162 : vector<2x8x8xf32>
    %164 = math.exp %163 : vector<2x8x8xf32>
    %cst_34 = arith.constant dense<0.000000e+00> : vector<2x8xf32>
    %165 = vector.multi_reduction <add>, %164, %cst_34 [2] : vector<2x8x8xf32> to vector<2x8xf32>
    %166 = vector.shape_cast %165 : vector<2x8xf32> to vector<2x8x1xf32>
    %167 = tpu.reciprocal %166 {approx = true} : vector<2x8x1xf32> -> vector<2x8x1xf32>
    %168 = vector.broadcast %167 : vector<2x8x1xf32> to vector<2x8x8xf32>
    %169 = arith.mulf %164, %168 : vector<2x8x8xf32>
    %170 = arith.truncf %169 : vector<2x8x8xf32> to vector<2x8x8xbf16>
    "tpu.trace_start"() <{level = 10 : i32, message = "bqk,bkd->bqd"}> : () -> ()
    %cst_35 = arith.constant dense<0.000000e+00> : vector<2x8x8xf32>
    %171 = tpu.matmul %170, %106, %cst_35 {dimension_numbers = #tpu.dot_dimension_numbers<[2], [1], [1], [2], [0, 0, 0, 1, 1, 2], [0], [0]>} : vector<2x8x8xbf16>, vector<2x8x8xbf16>, vector<2x8x8xf32> -> vector<2x8x8xf32>
    "tpu.trace_stop"() : () -> ()
    %172 = tpu.concatenate %73, %101, %143, %171 in 2 : vector<2x8x8xf32>, vector<2x8x8xf32>, vector<2x8x8xf32>, vector<2x8x8xf32> -> vector<2x8x32xf32>
    %173 = vector.shape_cast %172 : vector<2x8x32xf32> to vector<16x32xf32>
    %cst_36 = arith.constant 0.000000e+00 : f32
    %174 = vector.broadcast %cst_36 : f32 to vector<16x96xf32>
    %175 = tpu.concatenate %173, %174 in 1 : vector<16x32xf32>, vector<16x96xf32> -> vector<16x128xf32>
    %176 = arith.addf %0, %175 : vector<16x128xf32>
    %c0_37 = arith.constant 0 : index
    %c0_38 = arith.constant 0 : index
    %177 = vector.load %arg7[%c0_37, %c0_38] : memref<1x128xf32, #tpu.memory_space<vmem>>, vector<1x128xf32>
    %178 = arith.mulf %176, %176 : vector<16x128xf32>
    %cst_39 = arith.constant dense<0.000000e+00> : vector<16xf32>
    %179 = vector.multi_reduction <add>, %178, %cst_39 [1] : vector<16x128xf32> to vector<16xf32>
    %180 = vector.shape_cast %179 : vector<16xf32> to vector<16x1xf32>
    %cst_40 = arith.constant 3.125000e-02 : f32
    %181 = vector.broadcast %cst_40 : f32 to vector<16x1xf32>
    %182 = arith.mulf %180, %181 : vector<16x1xf32>
    %cst_41 = arith.constant 9.99999974E-6 : f32
    %183 = vector.broadcast %cst_41 : f32 to vector<16x1xf32>
    %184 = arith.addf %182, %183 : vector<16x1xf32>
    %185 = math.rsqrt %184 : vector<16x1xf32>
    %186 = vector.broadcast %185 : vector<16x1xf32> to vector<16x128xf32>
    %187 = arith.mulf %176, %186 : vector<16x128xf32>
    %188 = vector.broadcast %177 : vector<1x128xf32> to vector<16x128xf32>
    %189 = arith.mulf %187, %188 : vector<16x128xf32>
    %190 = arith.truncf %189 : vector<16x128xf32> to vector<16x128xbf16>
    %c0_42 = arith.constant 0 : index
    %c0_43 = arith.constant 0 : index
    %191 = vector.load %arg8[%c0_42, %c0_43] : memref<128x256xbf16, #tpu.memory_space<vmem>>, vector<128x256xbf16>
    %cst_44 = arith.constant dense<0.000000e+00> : vector<16x256xf32>
    %192 = tpu.matmul %190, %191, %cst_44 {dimension_numbers = #tpu.dot_dimension_numbers<[1], [0], [0], [1], [0, 0, 1, 1], [], []>} : vector<16x128xbf16>, vector<128x256xbf16>, vector<16x256xf32> -> vector<16x256xf32>
    %193 = vector.extract_strided_slice %192 {offsets = [0, 0], sizes = [16, 128], strides = [1, 1]} : vector<16x256xf32> to vector<16x128xf32>
    %194 = vector.extract_strided_slice %192 {offsets = [0, 128], sizes = [16, 128], strides = [1, 1]} : vector<16x256xf32> to vector<16x128xf32>
    %cst_45 = arith.constant 0.000000e+00 : f32
    %195 = vector.broadcast %cst_45 : f32 to vector<16x128xf32>
    %196 = arith.subf %195, %193 : vector<16x128xf32>
    %197 = math.exp %196 : vector<16x128xf32>
    %cst_46 = arith.constant 1.000000e+00 : f32
    %198 = vector.broadcast %cst_46 : f32 to vector<16x128xf32>
    %199 = arith.addf %198, %197 : vector<16x128xf32>
    %200 = tpu.reciprocal %199 {approx = true} : vector<16x128xf32> -> vector<16x128xf32>
    %201 = arith.mulf %193, %200 : vector<16x128xf32>
    %202 = arith.mulf %201, %194 : vector<16x128xf32>
    %203 = arith.truncf %202 : vector<16x128xf32> to vector<16x128xbf16>
    %c0_47 = arith.constant 0 : index
    %c0_48 = arith.constant 0 : index
    %204 = vector.load %arg9[%c0_47, %c0_48] : memref<128x128xbf16, #tpu.memory_space<vmem>>, vector<128x128xbf16>
    %cst_49 = arith.constant dense<0.000000e+00> : vector<16x128xf32>
    %205 = tpu.matmul %203, %204, %cst_49 {dimension_numbers = #tpu.dot_dimension_numbers<[1], [0], [0], [1], [0, 0, 1, 1], [], []>} : vector<16x128xbf16>, vector<128x128xbf16>, vector<16x128xf32> -> vector<16x128xf32>
    %206 = arith.addf %176, %205 : vector<16x128xf32>
    %c0_50 = arith.constant 0 : index
    %c0_51 = arith.constant 0 : index
    %207 = vector.load %arg10[%c0_50, %c0_51] : memref<16x128xf32, #tpu.memory_space<vmem>>, vector<16x128xf32>
    tpu.vector_store %arg10[%c0_50, %c0_51], %206 {strides = array<i32>} : memref<16x128xf32, #tpu.memory_space<vmem>>, vector<16x128xf32>,
    return
  }
}

</mosaic_0001>

<bundles_post_ra>
// kernel: neg.1
= control target key start
LH: loop header
LB: loop body
LE: loop exit
PB: predicated region body
PF: predicated region fallthrough
CT: control target
= control target key end

     0   :  { %s24_s0 = inlined_call_operand.vmem [shape: f32[8,4], index: 0, kind: input, shape index: {}]   ;;  %s25_s1 = inlined_call_operand.vmem [shape: f32[8,4], index: 1, kind: output, shape index: {}]  }
   0x1   :  { %v2_v0 = vld [vmem:[%s24_s0] sm:$0xff] }
   0x2   :  { %v5_v1 = vxor.u32 2147483648, %v2_v0 }
   0x4   :  { %7 = vst [vmem:[%s25_s1] sm:$0xff] %v5_v1 }

// kernel: transformer_forward.5
= control target key start
LH: loop header
LB: loop body
LE: loop exit
PB: predicated region body
PF: predicated region fallthrough
CT: control target
= control target key end

     0   :  { %v204_v2 = vmov 0.0   ;;  %vm205_vm0 = vmmov 0   ;;  %s265_s0 = inlined_call_operand.vmem [shape: f32[16,128], index: 0, kind: input, shape index: {}]   ;;  %s266_s2 = inlined_call_operand.vmem [shape: bf16[128,128], index: 2, kind: input, shape index: {}]   ;;  %s267_s1 = inlined_call_operand.vmem [shape: f32[1,128], index: 1, kind: input, shape index: {}]   ;;  %s268_s3 = inlined_call_operand.vmem [shape: f32[16,128], index: 3, kind: output, shape index: {}]  }
   0x1   :  { %v15_v0 = vld [vmem:[%s265_s0] sm:$0xff]  ;;  %v16_v1 = vld [vmem:[%s265_s0 + $0x8] sm:$0xff]  ;;  %170 = vmatprep.subr.bf16.mxu0 %v204_v2  ;;  %v194_v7 = vld [vmem:[%s266_s2 + $0x10] sm:$0xff]   ;;  %186 = vmatprep.mubr.msk.bf16.mxu0 %vm205_vm0, %v204_v2 }
   0x2   :  { %v18_v3 = vmul.f32 %v15_v0, %v15_v0  ;;  %v192_v4 = vld [vmem:[%s266_s2] sm:$0xff]   ;;  %v193_v5 = vld [vmem:[%s266_s2 + $0x8] sm:$0xff]   ;;  %v19_v6 = vmul.f32 %v16_v1, %v16_v1  ;;  %v195_v8 = vld [vmem:[%s266_s2 + $0x18] sm:$0xff]  }
   0x3   :  { %171 = vmatpush3.bf16.msra.mxu0 %v192_v4  ;;  %v196_v9 = vld [vmem:[%s266_s2 + $0x20] sm:$0xff]   ;;  %v197_v10 = vld [vmem:[%s266_s2 + $0x28] sm:$0xff]   ;;  %v198_v11 = vld [vmem:[%s266_s2 + $0x30] sm:$0xff]  }
   0x4   :  { %20 = vadd.xlane.f32.xlu0 %v18_v3  ;;  %172 = vmatprep.subr.bf16.mxu0 %v204_v2  ;;  %v199_v12 = vld [vmem:[%s266_s2 + $0x38] sm:$0xff]   ;;  %v152_v22 = vld [vmem:[%s267_s1] ss:$0 sm:$0xff] }
   0x7   :  { %173 = vmatpush3.bf16.msra.mxu0 %v193_v5 }
   0x8   :  { %22 = vadd.xlane.f32.xlu0 %v19_v6  ;;  %174 = vmatprep.subr.bf16.mxu0 %v204_v2 }
   0xb   :  { %175 = vmatpush3.bf16.msra.mxu0 %v194_v7 }
   0xc   :  { %176 = vmatprep.subr.bf16.mxu0 %v204_v2 }
   0xf   :  { %177 = vmatpush3.bf16.msra.mxu0 %v195_v8 }
  0x10   :  { %178 = vmatprep.subr.bf16.mxu0 %v204_v2 }
  0x13   :  { %179 = vmatpush3.bf16.msra.mxu0 %v196_v9 }
  0x14   :  { %180 = vmatprep.subr.bf16.mxu0 %v204_v2 }
  0x17   :  { %181 = vmatpush3.bf16.msra.mxu0 %v197_v10 }
  0x18   :  { %182 = vmatprep.subr.bf16.mxu0 %v204_v2 }
  0x1b   :  { %183 = vmatpush3.bf16.msra.mxu0 %v198_v11 }
  0x1c   :  { %184 = vmatprep.subr.bf16.mxu0 %v204_v2 }
  0x1f   :  { %185 = vmatpush3.bf16.msra.mxu0 %v199_v12 }
  0x91   :  { %v21_v13 = vpop.xlane.xlu0 %20 }
  0x92   :  { %v24_v14 = vmul.f32 0.03125, %v21_v13 }
  0x94   :  { %v26_v15 = vadd.f32 1e-05, %v24_v14 }
  0x95   :  { %v23_v16 = vpop.xlane.xlu0 %22 }
  0x96   :  { %200 = vrsqrt.f32 %v26_v15  ;;  %v25_v17 = vmul.f32 0.03125, %v23_v16 }
  0x98   :  { %v27_v18 = vadd.f32 1e-05, %v25_v17 }
  0x9a   :  { %202 = vrsqrt.f32 %v27_v18 }
  0xa0   :  { %v201_v19 = vpop.eup %200 }
  0xa1   :  { %v30_v20 = vmul.f32 %v201_v19, %v15_v0 }
  0xa3   :  { %v38_v24 = vmul.f32 %v152_v22, %v30_v20 }
  0xa4   :  { %v203_v21 = vpop.eup %202 }
  0xa5   :  { %v31_v23 = vmul.f32 %v203_v21, %v16_v1 }
  0xa7   :  { %v39_v25 = vmul.f32 %v152_v22, %v31_v23 }
  0xa9   :  { %v40_v26 = vpack.c.bf16 %v39_v25, %v38_v24 }
  0xab   :  { %187 = vmatmul.mubr.bf16.vlgmr.msra.gmra.mrb[0].mxu0 %v40_v26 }
 0x17e   :  { %v139_v27 = vpop.f32.mrb[0].mxu0 }
 0x17f   :  { %146 = vst [vmem:[%s268_s3] sm:$0xff] %v139_v27  ;;  %v188_v28 = vpop.f32.mrb[1].mxu0 }
 0x180   :  { %v142_v29 = vpop.f32.mrb[2].mxu0 }
 0x181   :  { %147 = vst [vmem:[%s268_s3 + $0x8] sm:$0xff] %v142_v29  ;;  %v189_v30 = vpop.f32.mrb[3].mxu0 }

// kernel: transformer_forward.3
= control target key start
LH: loop header
LB: loop body
LE: loop exit
PB: predicated region body
PF: predicated region fallthrough
CT: control target
= control target key end

     0   :  { %v1876_v2 = vmov 0.0   ;;  %vm1877_vm0 = vmmov 0   ;;  %s1880_s15 = smov 4   ;;  %s1881_s18 = smov 124   ;;  %vm198_vm1 = vcmask 31744   ;;  %vm240_vm2 = vcmask 64512   ;;  %s2381_s0 = inlined_call_operand.vmem [shape: f32[16,128], index: 0, kind: input, shape index: {}]   ;;  %s2382_s2 = inlined_call_operand.vmem [shape: bf16[128,64], index: 2, kind: input, shape index: {}]   ;;  %s2383_s1 = inlined_call_operand.vmem [shape: f32[1,128], index: 1, kind: input, shape index: {}]   ;;  %s2384_s5 = inlined_call_operand.vmem [shape: f32[8,8], index: 5, kind: input, shape index: {}]   ;;  %s2385_s6 = inlined_call_operand.vmem [shape: f32[8,8], index: 6, kind: input, shape index: {}]   ;;  %s2386_s3 = inlined_call_operand.vmem [shape: f32[8,8], index: 3, kind: input, shape index: {}]   ;;  %s2387_s4 = inlined_call_operand.vmem [shape: f32[8,8], index: 4, kind: input, shape index: {}]   ;;  %s2388_s8 = inlined_call_operand.vmem [shape: bf16[128,256], index: 8, kind: input, shape index: {}]   ;;  %s2389_s7 = inlined_call_operand.vmem [shape: f32[1,128], index: 7, kind: input, shape index: {}]   ;;  %s2390_s9 = inlined_call_operand.vmem [shape: bf16[128,128], index: 9, kind: input, shape index: {}]   ;;  %s2391_s10 = inlined_call_operand.vmem [shape: f32[16,128], index: 10, kind: output, shape index: {}]  }
   0x1   :  { %v36_v0 = vld [vmem:[%s2381_s0] sm:$0xff]  ;;  %v37_v1 = vld [vmem:[%s2381_s0 + $0x8] sm:$0xff]  ;;  %1628 = vmatprep.subr.bf16.mxu0 %v1876_v2  ;;  %1648 = vmatprep.subr.bf16.mxu1 %v1876_v2  ;;  %v1788_v7 = vld [vmem:[%s2382_s2 + $0x10] sm:$0xff]   ;;  %s1882_s19 = smov 32   ;;  %s1886_s25 = smov 80   ;;  %vm370_vm4 = vcmask 1043456  }
   0x2   :  { %v39_v3 = vmul.f32 %v36_v0, %v36_v0  ;;  %v1786_v4 = vld [vmem:[%s2382_s2] sm:$0xff]   ;;  %v1787_v5 = vld [vmem:[%s2382_s2 + $0x8] sm:$0xff]   ;;  %v40_v6 = vmul.f32 %v37_v1, %v37_v1  ;;  %v1789_v8 = vld [vmem:[%s2382_s2 + $0x18] sm:$0xff]   ;;  %1644 = vmatprep.mubr.msk.bf16.mxu0 %vm1877_vm0, %v1876_v2  ;;  %1650 = vmatprep.mubr.msk.bf16.mxu1 %vm1877_vm0, %v1876_v2  ;;  %s1887_s26 = smov 120   ;;  %s1888_s27 = smov 84   ;;  %vm1226_vm5 = vcmask 130048  }
   0x3   :  { %1629 = vmatpush3.bf16.msra.mxu0 %v1786_v4  ;;  %v1790_v9 = vld [vmem:[%s2382_s2 + $0x20] sm:$0xff]   ;;  %v1791_v10 = vld [vmem:[%s2382_s2 + $0x28] sm:$0xff]   ;;  %v1792_v11 = vld [vmem:[%s2382_s2 + $0x30] sm:$0xff]   ;;  %s1889_s28 = smov 108   ;;  %s1890_s29 = smov 40   ;;  %vm1229_vm6 = vcmask 195584  }
   0x4   :  { %41 = vadd.xlane.f32.xlu0 %v39_v3  ;;  %1630 = vmatprep.subr.bf16.mxu0 %v1876_v2  ;;  %v1793_v12 = vld [vmem:[%s2382_s2 + $0x38] sm:$0xff]   ;;  %v1528_v22 = vld [vmem:[%s2383_s1] ss:$0 sm:$0xff]  ;;  %s1878_s2 = smov 92   ;;  %s1879_s1 = smov 100   ;;  %vm1232_vm7 = vcmask 261120  }
   0x5   :  { %v2015_v31 = vld [vmem:[%s2384_s5] sm:$0xff]  ;;  %s1883_s5 = smov 96   ;;  %s1891_s30 = smov 16  }
   0x6   :  { %v2024_v33 = vld [vmem:[%s2385_s6] sm:$0xff]  ;;  %s1892_s11 = smov 88   ;;  %s1893_s12 = smov 112  }
   0x7   :  { %1631 = vmatpush3.bf16.msra.mxu0 %v1787_v5  ;;  %v2049_v52 = vld [vmem:[%s2386_s3] sm:$0xff]  ;;  %s1884_s3 = smov 116   ;;  %s1894_s13 = smov 24  }
   0x8   :  { %43 = vadd.xlane.f32.xlu0 %v40_v6  ;;  %1632 = vmatprep.subr.bf16.mxu0 %v1876_v2  ;;  %v2054_v53 = vld [vmem:[%s2387_s4] sm:$0xff]  ;;  %s1885_s4 = smov 8   ;;  %s1895_s14 = smov 72  }
   0xb   :  { %1633 = vmatpush3.bf16.msra.mxu0 %v1788_v7  ;;  %v167_v7 = vlaneseq }
   0xc   :  { %1634 = vmatprep.subr.bf16.mxu0 %v1876_v2 }
   0xf   :  { %1635 = vmatpush3.bf16.msra.mxu0 %v1789_v8  ;;  %v168_v8 = vshrl.u32 %v167_v7, 7 }
  0x10   :  { %1636 = vmatprep.subr.bf16.mxu0 %v1876_v2 }
  0x13   :  { %1637 = vmatpush3.bf16.msra.mxu0 %v1790_v9  ;;  %v170_v9 = vand.u32 127, %v167_v7 }
  0x14   :  { %1638 = vmatprep.subr.bf16.mxu0 %v1876_v2 }
  0x15   :  { %vm2077_vm3 = vcmp.le.s32.totalorder %v170_v9, %v168_v8 }
  0x17   :  { %1639 = vmatpush3.bf16.msra.mxu0 %v1791_v10 }
  0x18   :  { %1640 = vmatprep.subr.bf16.mxu0 %v1876_v2 }
  0x1b   :  { %1641 = vmatpush3.bf16.msra.mxu0 %v1792_v11 }
  0x1c   :  { %1642 = vmatprep.subr.bf16.mxu0 %v1876_v2 }
  0x1f   :  { %1643 = vmatpush3.bf16.msra.mxu0 %v1793_v12 }
  0x20   :  { %1672 = vmatprep.subr.bf16.mxu0 %v1876_v2 }
  0x91   :  { %v42_v13 = vpop.xlane.xlu0 %41 }
  0x92   :  { %v45_v14 = vmul.f32 0.03125, %v42_v13 }
  0x94   :  { %v47_v15 = vadd.f32 1e-05, %v45_v14 }
  0x95   :  { %v44_v16 = vpop.xlane.xlu0 %43 }
  0x96   :  { %1826 = vrsqrt.f32 %v47_v15  ;;  %v46_v17 = vmul.f32 0.03125, %v44_v16 }
  0x98   :  { %v48_v18 = vadd.f32 1e-05, %v46_v17 }
  0x9a   :  { %1828 = vrsqrt.f32 %v48_v18 }
  0xa0   :  { %v1827_v19 = vpop.eup %1826 }
  0xa1   :  { %v51_v20 = vmul.f32 %v1827_v19, %v36_v0 }
  0xa3   :  { %v59_v24 = vmul.f32 %v1528_v22, %v51_v20 }
  0xa4   :  { %v1829_v21 = vpop.eup %1828 }
  0xa5   :  { %v52_v23 = vmul.f32 %v1829_v21, %v37_v1 }
  0xa7   :  { %v60_v25 = vmul.f32 %v1528_v22, %v52_v23 }
  0xa9   :  { %v61_v26 = vpack.c.bf16 %v60_v25, %v59_v24 }
  0xab   :  { %1645 = vmatmul.mubr.bf16.vlgmr.msra.gmra.mrb[0].mxu0 %v61_v26 }
  0xac   :  { %1674 = vmatprep.mubr.msk.bf16.mxu0 %vm1877_vm0, %v1876_v2 }
 0x17e   :  { %v2002_v27 = vpop.f32.mrb[0].mxu0 }
 0x17f   :  { %186 = vrot.lane.b32.xlu1 %v2002_v27, %s1878_s2  ;;  %v1646_v28 = vpop.f32.mrb[1].mxu0  ;;  %v215_v57 = vmul.f32 %v2049_v52, %v2002_v27 }
 0x180   :  { %v2005_v29 = vpop.f32.mrb[2].mxu0 }
 0x181   :  { %188 = vrot.lane.b32.xlu0 %v2005_v29, %s1878_s2  ;;  %v1647_v30 = vpop.f32.mrb[3].mxu0  ;;  %v216_v3 = vmul.f32 %v2049_v52, %v2005_v29  ;;  %s1896_s2 = smov 104  }
 0x183   :  { %192 = vrot.lane.b32.xlu1 %v2002_v27, %s1879_s1 }
 0x185   :  { %223 = vrot.lane.b32.xlu0 %v2002_v27, %s1880_s15 }
 0x187   :  { %194 = vrot.lane.b32.xlu1 %v2005_v29, %s1879_s1 }
 0x189   :  { %219 = vrot.lane.b32.xlu0 %v2005_v29, %s1881_s18 }
 0x18b   :  { %179 = vrot.lane.b32.xlu1 %v2015_v31, %s1882_s19 }
 0x1f1   :  { %v2019_v32 = vpop.permute.xlu1 %186 }
 0x1f3   :  { %v2032_v37 = vpop.permute.xlu0 %188 }
 0x1f5   :  { %v2026_v34 = vpop.permute.xlu1 %192 }
 0x1f6   :  { %v199_v35 = vsel %vm198_vm1, %v2019_v32, %v2026_v34 }
 0x1f7   :  { %v201_v36 = vmul.f32 %v199_v35, %v2024_v33  ;;  %v224_v54 = vpop.permute.xlu0 %223 }
 0x1f9   :  { %205 = vrot.lane.b32.xlu1 %v201_v36, %s1882_s19  ;;  %v2034_v38 = vpop.permute.xlu1 %194 }
 0x1fa   :  { %v200_v39 = vsel %vm198_vm1, %v2032_v37, %v2034_v38 }
 0x1fb   :  { %v202_v40 = vmul.f32 %v200_v39, %v2024_v33  ;;  %v220_v62 = vpop.permute.xlu0 %219 }
 0x1fd   :  { %207 = vrot.lane.b32.xlu1 %v202_v40, %s1882_s19  ;;  %v180_v41 = vpop.permute.xlu1 %179 }
 0x1fe   :  { %v182_v42 = vmul.f32 %v180_v41, %v2002_v27  ;;  %v183_v47 = vmul.f32 %v180_v41, %v2005_v29 }
 0x26b   :  { %v206_v43 = vpop.permute.xlu1 %205 }
 0x26c   :  { %v211_v44 = vadd.f32 %v206_v43, %v182_v42 }
 0x26e   :  { %v213_v45 = vpack.c.bf16 %v211_v44, %v211_v44 }
 0x26f   :  { %v208_v46 = vpop.permute.xlu1 %207 }
 0x270   :  { %238 = vrot.lane.b32.xlu1 %v213_v45, %s1883_s5  ;;  %v212_v48 = vadd.f32 %v208_v46, %v183_v47  ;;  %v2107_v47 = vpack.c.bf16 %v2005_v29, %v2005_v29 }
 0x272   :  { %v214_v49 = vpack.c.bf16 %v212_v48, %v212_v48  ;;  %v2112_v48 = vpack.c.bf16 %v2002_v27, %v2002_v27 }
 0x274   :  { %217 = vrot.lane.b32.xlu1 %v2002_v27, %s1881_s18 }
 0x278   :  { %288 = vrot.lane.b32.xlu1 %v214_v49, %s1883_s5 }
 0x27c   :  { %225 = vrot.lane.b32.xlu1 %v2005_v29, %s1880_s15 }
 0x2e2   :  { %v239_v50 = vpop.permute.xlu1 %238 }
 0x2e3   :  { %v245_v51 = vsel %vm240_vm2, %v239_v50, 0 }
 0x2e4   :  { %1649 = vmatpush3.bf16.xpose.msra.mxu1 %v245_v51  ;;  %1673 = vmatpush3.bf16.xpose.msra.mxu0 %v245_v51 }
 0x2e5   :  { %1654 = vmatprep.subr.bf16.mxu1 %v1876_v2  ;;  %1684 = vmatprep.subr.bf16.mxu0 %v1876_v2 }
 0x2e6   :  { %v218_v55 = vpop.permute.xlu1 %217 }
 0x2e7   :  { %v229_v56 = vsel %vm198_vm1, %v218_v55, %v224_v54 }
 0x2e8   :  { %v231_v58 = vmul.f32 %v229_v56, %v2054_v53 }
 0x2ea   :  { %v233_v59 = vadd.f32 %v231_v58, %v215_v57  ;;  %v289_v60 = vpop.permute.xlu1 %288 }
 0x2eb   :  { %v2063_v63 = vsel %vm240_vm2, %v289_v60, 0 }
 0x2ec   :  { %v235_v61 = vpack.c.bf16 %v233_v59, %v233_v59 }
 0x2ee   :  { %v226_v0 = vpop.permute.xlu1 %225  ;;  %1651 = vmatmul.mubr.msk.bf16.vlgmr.msra.gmra.mrb[0].mxu1 %vm240_vm2, %v235_v61 }
 0x2ef   :  { %v230_v1 = vsel %vm198_vm1, %v220_v62, %v226_v0  ;;  %1655 = vmatpush3.bf16.xpose.msra.mxu1 %v2063_v63  ;;  %1656 = vmatprep.mubr.msk.bf16.mxu1 %vm1877_vm0, %v1876_v2 }
 0x2f0   :  { %v232_v4 = vmul.f32 %v230_v1, %v2054_v53  ;;  %1660 = vmatprep.subr.bf16.mxu1 %v1876_v2 }
 0x2f2   :  { %v234_v5 = vadd.f32 %v232_v4, %v216_v3 }
 0x2f4   :  { %v236_v6 = vpack.c.bf16 %v234_v5, %v234_v5 }
 0x2f6   :  { %1657 = vmatmul.mubr.msk.bf16.vlgmr.msra.gmra.mrb[4].mxu1 %vm240_vm2, %v236_v6 }
 0x2f7   :  { %1662 = vmatprep.mubr.msk.bf16.mxu1 %vm1877_vm0, %v1876_v2 }
 0x3c1   :  { %v281_v11 = vpop.f32.mrb[0].mxu1 }
 0x3c2   :  { %v338_v12 = vsel %vm2077_vm3, %v281_v11, -1e+30  ;;  %v1652_v13 = vpop.f32.mrb[1].mxu1 }
 0x3c3   :  { %v284_v14 = vpop.f32.mrb[2].mxu1  ;;  %v340_v15 = vsel %vm240_vm2, %v338_v12, -inf }
 0x3c4   :  { %341 = vmax.xlane.f32.xlu0 %v340_v15  ;;  %v1653_v16 = vpop.f32.mrb[3].mxu1 }
 0x3c9   :  { %v330_v17 = vpop.f32.mrb[4].mxu1 }
 0x3ca   :  { %v339_v18 = vsel %vm2077_vm3, %v330_v17, -1e+30  ;;  %v1658_v19 = vpop.f32.mrb[5].mxu1 }
 0x3cb   :  { %v333_v20 = vpop.f32.mrb[6].mxu1  ;;  %v343_v21 = vsel %vm240_vm2, %v339_v18, -inf }
 0x3cc   :  { %344 = vmax.xlane.f32.xlu1 %v343_v21  ;;  %v1659_v22 = vpop.f32.mrb[7].mxu1 }
 0x3da   :  { %469 = vrot.lane.b32.xlu0 %v2002_v27, %s1884_s3 }
 0x3dd   :  { %471 = vrot.lane.b32.xlu1 %v2005_v29, %s1884_s3 }
 0x3de   :  { %464 = vrot.lane.b32.xlu0 %v2049_v52, %s1885_s4 }
 0x451   :  { %v342_v23 = vpop.xlane.xlu0 %341 }
 0x452   :  { %v346_v39 = vsub.f32 %v338_v12, %v342_v23 }
 0x454   :  { %v348_v41 = vmul.f32 1.442695, %v346_v39 }
 0x455   :  { %v2091_v24 = vpop.permute.xlu0 %469 }
 0x456   :  { %v475_v25 = vsel %vm198_vm1, %v2091_v24, %v218_v55  ;;  %1830 = vpow2.f32 %v348_v41 }
 0x457   :  { %v477_v26 = vmul.f32 %v475_v25, %v2054_v53 }
 0x459   :  { %481 = vrot.lane.b32.xlu1 %v477_v26, %s1885_s4  ;;  %v345_v28 = vpop.xlane.xlu1 %344  ;;  %v465_v49 = vpop.permute.xlu0 %464 }
 0x45a   :  { %v347_v40 = vsub.f32 %v339_v18, %v345_v28  ;;  %v467_v50 = vmul.f32 %v465_v49, %v2002_v27  ;;  %v468_v56 = vmul.f32 %v465_v49, %v2005_v29 }
 0x45c   :  { %v350_v42 = vmul.f32 1.442695, %v347_v40 }
 0x45d   :  { %v2097_v30 = vpop.permute.xlu1 %471 }
 0x45e   :  { %v476_v35 = vsel %vm198_vm1, %v2097_v30, %v220_v62  ;;  %1832 = vpow2.f32 %v350_v42 }
 0x45f   :  { %v478_v36 = vmul.f32 %v476_v35, %v2054_v53 }
 0x460   :  { %v1831_v43 = vpop.eup %1830 }
 0x461   :  { %483 = vrot.lane.b32.xlu0 %v478_v36, %s1885_s4  ;;  %v352_v45 = vsel %vm240_vm2, %v1831_v43, 0.0 }
 0x468   :  { %v1833_v44 = vpop.eup %1832 }
 0x469   :  { %v355_v46 = vsel %vm240_vm2, %v1833_v44, 0.0 }
 0x47d   :  { %353 = vadd.xlane.f32.xlu1 %v352_v45 }
 0x480   :  { %356 = vadd.xlane.f32.xlu0 %v355_v46 }
 0x48e   :  { %415 = vrot.lane.b32.xlu1 %v2107_v47, %s1886_s25 }
 0x496   :  { %365 = vrot.lane.b32.xlu0 %v2112_v48, %s1886_s25 }
 0x4cb   :  { %v482_v51 = vpop.permute.xlu1 %481 }
 0x4cc   :  { %v487_v54 = vadd.f32 %v482_v51, %v467_v50 }
 0x4ce   :  { %v489_v55 = vpack.c.bf16 %v487_v54, %v487_v54 }
 0x4d0   :  { %492 = vrot.lane.b32.xlu1 %v489_v55, %s1887_s26 }
 0x4d3   :  { %v484_v57 = vpop.permute.xlu0 %483 }
 0x4d4   :  { %v488_v58 = vadd.f32 %v484_v57, %v468_v56  ;;  %700 = vrot.lane.b32.xlu1 %v2002_v27, %s1888_s27 }
 0x4d6   :  { %v490_v59 = vpack.c.bf16 %v488_v58, %v488_v58 }
 0x4d8   :  { %538 = vrot.lane.b32.xlu0 %v490_v59, %s1887_s26 }
 0x4dc   :  { %702 = vrot.lane.b32.xlu0 %v2005_v29, %s1888_s27 }
 0x50a   :  { %v354_v60 = vpop.xlane.xlu1 %353 }
 0x50b   :  { %1834 = vrcp.f32 %v354_v60 }
 0x50d   :  { %v357_v61 = vpop.xlane.xlu0 %356 }
 0x50e   :  { %1836 = vrcp.f32 %v357_v61  ;;  %v416_v4 = vpop.permute.xlu1 %415 }
 0x50f   :  { %v421_v7 = vsel %vm370_vm4, %v416_v4, 0 }
 0x511   :  { %v366_v62 = vpop.permute.xlu0 %365 }
 0x512   :  { %v372_v0 = vsel %vm370_vm4, %v366_v62, 0 }
 0x513   :  { %1661 = vmatpush3.bf16.msra.mxu1 %v372_v0 }
 0x514   :  { %1666 = vmatprep.subr.bf16.mxu1 %v1876_v2 }
 0x515   :  { %v1835_v1 = vpop.eup %1834 }
 0x516   :  { %v360_v3 = vmul.f32 %v1835_v1, %v1831_v43 }
 0x518   :  { %v362_v5 = vpack.c.bf16 %v360_v3, %v360_v3  ;;  %v1837_v6 = vpop.eup %1836 }
 0x519   :  { %v361_v8 = vmul.f32 %v1837_v6, %v1833_v44 }
 0x51a   :  { %1663 = vmatmul.mubr.msk.bf16.vlgmr.msra.gmra.mrb[8].mxu1 %vm240_vm2, %v362_v5 }
 0x51b   :  { %1667 = vmatpush3.bf16.msra.mxu1 %v421_v7  ;;  %1668 = vmatprep.mubr.msk.bf16.mxu1 %vm1877_vm0, %v1876_v2  ;;  %v363_v9 = vpack.c.bf16 %v361_v8, %v361_v8 }
 0x51c   :  { %1678 = vmatprep.subr.bf16.mxu1 %v1876_v2 }
 0x522   :  { %1669 = vmatmul.mubr.msk.bf16.vlgmr.msra.gmra.mrb[12].mxu1 %vm240_vm2, %v363_v9 }
 0x523   :  { %1680 = vmatprep.mubr.msk.bf16.mxu1 %vm1877_vm0, %v1876_v2 }
 0x524   :  { %1679 = vmatpush3.bf16.xpose.msra.mxu1 %v2063_v63 }
 0x525   :  { %1690 = vmatprep.subr.bf16.mxu1 %v1876_v2 }
 0x542   :  { %v493_v11 = vpop.permute.xlu1 %492 }
 0x543   :  { %1675 = vmatmul.mubr.msk.bf16.vlgmr.msra.gmra.mrb[4].mxu0 %vm240_vm2, %v493_v11 }
 0x544   :  { %1685 = vmatpush3.bf16.msra.mxu0 %v372_v0  ;;  %1686 = vmatprep.mubr.msk.bf16.mxu0 %vm1877_vm0, %v1876_v2 }
 0x545   :  { %1696 = vmatprep.subr.bf16.mxu0 %v1876_v2 }
 0x546   :  { %v701_v45 = vpop.permute.xlu1 %700 }
 0x547   :  { %v706_v46 = vsel %vm198_vm1, %v701_v45, %v2019_v32 }
 0x548   :  { %v708_v49 = vmul.f32 %v706_v46, %v2024_v33 }
 0x54a   :  { %v539_v12 = vpop.permute.xlu0 %538 }
 0x54b   :  { %1681 = vmatmul.mubr.msk.bf16.vlgmr.msra.gmra.mrb[16].mxu1 %vm240_vm2, %v539_v12 }
 0x54c   :  { %1691 = vmatpush3.bf16.msra.mxu1 %v421_v7  ;;  %1692 = vmatprep.mubr.msk.bf16.mxu1 %vm1877_vm0, %v1876_v2 }
 0x54d   :  { %1702 = vmatprep.subr.bf16.mxu1 %v1876_v2 }
 0x54e   :  { %v703_v42 = vpop.permute.xlu0 %702 }
 0x54f   :  { %v707_v43 = vsel %vm198_vm1, %v703_v42, %v2032_v37 }
 0x550   :  { %v709_v44 = vmul.f32 %v707_v43, %v2024_v33 }
 0x5ed   :  { %v2139_v63 = vpop.f32.mrb[8].mxu1 }
 0x5ee   :  { %v1664_v13 = vpop.f32.mrb[9].mxu1 }
 0x5ef   :  { %v411_v14 = vpop.f32.mrb[10].mxu1 }
 0x5f0   :  { %v1665_v15 = vpop.f32.mrb[11].mxu1 }
 0x5f5   :  { %v2141_v16 = vpop.f32.mrb[12].mxu1 }
 0x5f6   :  { %v1670_v17 = vpop.f32.mrb[13].mxu1 }
 0x5f7   :  { %v460_v18 = vpop.f32.mrb[14].mxu1 }
 0x5f8   :  { %v1671_v19 = vpop.f32.mrb[15].mxu1 }
 0x616   :  { %v531_v20 = vpop.f32.mrb[4].mxu0 }
 0x617   :  { %v583_v21 = vsel %vm2077_vm3, %v531_v20, -1e+30  ;;  %v1676_v22 = vpop.f32.mrb[5].mxu0 }
 0x618   :  { %v534_v23 = vpop.f32.mrb[6].mxu0  ;;  %v585_v25 = vsel %vm240_vm2, %v583_v21, -inf }
 0x619   :  { %586 = vmax.xlane.f32.xlu1 %v585_v25  ;;  %v1677_v26 = vpop.f32.mrb[7].mxu0 }
 0x61e   :  { %v577_v28 = vpop.f32.mrb[16].mxu1 }
 0x61f   :  { %v584_v35 = vsel %vm2077_vm3, %v577_v28, -1e+30  ;;  %v1682_v36 = vpop.f32.mrb[17].mxu1 }
 0x620   :  { %v580_v39 = vpop.f32.mrb[18].mxu1  ;;  %v588_v40 = vsel %vm240_vm2, %v584_v35, -inf }
 0x621   :  { %589 = vmax.xlane.f32.xlu0 %v588_v40  ;;  %v1683_v41 = vpop.f32.mrb[19].mxu1 }
 0x62a   :  { %729 = vrot.lane.b32.xlu1 %v2005_v29, %s1889_s28 }
 0x62e   :  { %695 = vrot.lane.b32.xlu1 %v2015_v31, %s1890_s29 }
 0x632   :  { %714 = vrot.lane.b32.xlu1 %v709_v44, %s1890_s29 }
 0x637   :  { %727 = vrot.lane.b32.xlu0 %v2002_v27, %s1889_s28 }
 0x63b   :  { %712 = vrot.lane.b32.xlu0 %v708_v49, %s1890_s29 }
 0x63f   :  { %722 = vrot.lane.b32.xlu0 %v2049_v52, %s1891_s30 }
 0x6a6   :  { %v587_v37 = vpop.xlane.xlu1 %586 }
 0x6a7   :  { %v591_v58 = vsub.f32 %v583_v21, %v587_v37 }
 0x6aa   :  { %v2160_v50 = vpop.permute.xlu1 %729 }
 0x6ab   :  { %v734_v31 = vsel %vm198_vm1, %v2160_v50, %v2097_v30  ;;  %v593_v30 = vmul.f32 1.442695, %v591_v58 }
 0x6ac   :  { %v736_v51 = vmul.f32 %v734_v31, %v2054_v53 }
 0x6ae   :  { %v590_v54 = vpop.xlane.xlu0 %589  ;;  %741 = vrot.lane.b32.xlu0 %v736_v51, %s1891_s30  ;;  %v696_v62 = vpop.permute.xlu1 %695 }
 0x6af   :  { %v592_v56 = vsub.f32 %v584_v35, %v590_v54  ;;  %v699_v6 = vmul.f32 %v696_v62, %v2005_v29 }
 0x6b1   :  { %v595_v57 = vmul.f32 1.442695, %v592_v56 }
 0x6b2   :  { %v2167_v32 = vpop.permute.xlu0 %727  ;;  %v715_v5 = vpop.permute.xlu1 %714 }
 0x6b3   :  { %v733_v33 = vsel %vm198_vm1, %v2167_v32, %v2091_v24  ;;  %1838 = vpow2.f32 %v595_v57  ;;  %v698_v24 = vmul.f32 %v696_v62, %v2002_v27  ;;  %v719_v7 = vadd.f32 %v715_v5, %v699_v6 }
 0x6b4   :  { %v735_v55 = vmul.f32 %v733_v33, %v2054_v53  ;;  %1840 = vpow2.f32 %v593_v30 }
 0x6b5   :  { %v721_v8 = vpack.c.bf16 %v719_v7, %v719_v7 }
 0x6b6   :  { %739 = vrot.lane.b32.xlu1 %v735_v55, %s1891_s30  ;;  %v713_v1 = vpop.permute.xlu0 %712 }
 0x6b7   :  { %v718_v3 = vadd.f32 %v713_v1, %v698_v24  ;;  %v980_v24 = vsel %vm198_vm1, %v2026_v34, %v2167_v32 }
 0x6b9   :  { %v720_v4 = vpack.c.bf16 %v718_v3, %v718_v3  ;;  %v982_v3 = vmul.f32 %v980_v24, %v2054_v53 }
 0x6ba   :  { %v723_v9 = vpop.permute.xlu0 %722 }
 0x6bb   :  { %v726_v11 = vmul.f32 %v723_v9, %v2005_v29  ;;  %v725_v15 = vmul.f32 %v723_v9, %v2002_v27 }
 0x6bd   :  { %v1839_v59 = vpop.eup %1838 }
 0x6be   :  { %v600_v60 = vsel %vm240_vm2, %v1839_v59, 0.0  ;;  %v1841_v61 = vpop.eup %1840 }
 0x6bf   :  { %v597_v0 = vsel %vm240_vm2, %v1841_v61, 0.0 }
 0x6cd   :  { %601 = vadd.xlane.f32.xlu0 %v600_v60 }
 0x6da   :  { %598 = vadd.xlane.f32.xlu1 %v597_v0 }
 0x6e3   :  { %753 = vrot.lane.b32.xlu0 %v720_v4, %s1892_s11  ;;  %v981_v4 = vsel %vm198_vm1, %v2034_v38, %v2160_v50 }
 0x6e4   :  { %v983_v5 = vmul.f32 %v981_v4, %v2054_v53 }
 0x6eb   :  { %805 = vrot.lane.b32.xlu1 %v721_v8, %s1892_s11 }
 0x720   :  { %v742_v12 = vpop.permute.xlu0 %741 }
 0x721   :  { %v746_v13 = vadd.f32 %v742_v12, %v726_v11 }
 0x723   :  { %v748_v14 = vpack.c.bf16 %v746_v13, %v746_v13 }
 0x725   :  { %802 = vrot.lane.b32.xlu0 %v748_v14, %s1893_s12 }
 0x728   :  { %v740_v17 = vpop.permute.xlu1 %739 }
 0x729   :  { %v745_v18 = vadd.f32 %v740_v17, %v725_v15 }
 0x72b   :  { %v747_v19 = vpack.c.bf16 %v745_v18, %v745_v18 }
 0x72d   :  { %750 = vrot.lane.b32.xlu1 %v747_v19, %s1893_s12 }
 0x75a   :  { %v602_v20 = vpop.xlane.xlu0 %601 }
 0x75b   :  { %1842 = vrcp.f32 %v602_v20 }
 0x75e   :  { %v754_v39 = vpop.permute.xlu0 %753 }
 0x75f   :  { %v2189_v41 = vsel %vm240_vm2, %v754_v39, 0 }
 0x765   :  { %v1843_v21 = vpop.eup %1842 }
 0x766   :  { %v606_v22 = vmul.f32 %v1843_v21, %v1839_v59 }
 0x767   :  { %v599_v23 = vpop.xlane.xlu1 %598 }
 0x768   :  { %1844 = vrcp.f32 %v599_v23  ;;  %v608_v25 = vpack.c.bf16 %v606_v22, %v606_v22 }
 0x76a   :  { %1693 = vmatmul.mubr.msk.bf16.vlgmr.msra.gmra.mrb[20].mxu1 %vm240_vm2, %v608_v25 }
 0x76b   :  { %v806_v26 = vpop.permute.xlu1 %805  ;;  %1704 = vmatprep.mubr.msk.bf16.mxu1 %vm1877_vm0, %v1876_v2 }
 0x76c   :  { %v2184_v28 = vsel %vm240_vm2, %v806_v26, 0 }
 0x76d   :  { %1703 = vmatpush3.bf16.xpose.msra.mxu1 %v2184_v28 }
 0x76e   :  { %1714 = vmatprep.subr.bf16.mxu1 %v1876_v2 }
 0x772   :  { %v1845_v35 = vpop.eup %1844 }
 0x773   :  { %v605_v36 = vmul.f32 %v1845_v35, %v1841_v61 }
 0x775   :  { %v607_v40 = vpack.c.bf16 %v605_v36, %v605_v36 }
 0x777   :  { %1687 = vmatmul.mubr.msk.bf16.vlgmr.msra.gmra.mrb[8].mxu0 %vm240_vm2, %v607_v40 }
 0x778   :  { %1697 = vmatpush3.bf16.xpose.msra.mxu0 %v2189_v41  ;;  %1698 = vmatprep.mubr.msk.bf16.mxu0 %vm1877_vm0, %v1876_v2 }
 0x779   :  { %1708 = vmatprep.subr.bf16.mxu0 %v1876_v2 }
 0x797   :  { %v803_v42 = vpop.permute.xlu0 %802 }
 0x798   :  { %1705 = vmatmul.mubr.msk.bf16.vlgmr.msra.gmra.mrb[24].mxu1 %vm240_vm2, %v803_v42 }
 0x799   :  { %1716 = vmatprep.mubr.msk.bf16.mxu1 %vm1877_vm0, %v1876_v2 }
 0x79f   :  { %v751_v43 = vpop.permute.xlu1 %750 }
 0x7a0   :  { %1699 = vmatmul.mubr.msk.bf16.vlgmr.msra.gmra.mrb[12].mxu0 %vm240_vm2, %v751_v43 }
 0x7a1   :  { %1710 = vmatprep.mubr.msk.bf16.mxu0 %vm1877_vm0, %v1876_v2 }
 0x83d   :  { %v2202_v44 = vpop.f32.mrb[20].mxu1 }
 0x83e   :  { %v1694_v45 = vpop.f32.mrb[21].mxu1 }
 0x83f   :  { %v692_v46 = vpop.f32.mrb[22].mxu1 }
 0x840   :  { %v1695_v49 = vpop.f32.mrb[23].mxu1 }
 0x84a   :  { %v2204_v37 = vpop.f32.mrb[8].mxu0 }
 0x84b   :  { %v1688_v31 = vpop.f32.mrb[9].mxu0 }
 0x84c   :  { %v649_v51 = vpop.f32.mrb[10].mxu0 }
 0x84d   :  { %v1689_v54 = vpop.f32.mrb[11].mxu0 }
 0x86b   :  { %v847_v33 = vpop.f32.mrb[24].mxu1 }
 0x86c   :  { %v854_v55 = vsel %vm2077_vm3, %v847_v33, -1e+30  ;;  %v1706_v56 = vpop.f32.mrb[25].mxu1 }
 0x86d   :  { %v850_v57 = vpop.f32.mrb[26].mxu1  ;;  %v858_v58 = vsel %vm240_vm2, %v854_v55, -inf }
 0x86e   :  { %859 = vmax.xlane.f32.xlu0 %v858_v58  ;;  %v1707_v30 = vpop.f32.mrb[27].mxu1 }
 0x873   :  { %v795_v59 = vpop.f32.mrb[12].mxu0 }
 0x874   :  { %v853_v60 = vsel %vm2077_vm3, %v795_v59, -1e+30  ;;  %v1700_v61 = vpop.f32.mrb[13].mxu0 }
 0x875   :  { %v798_v62 = vpop.f32.mrb[14].mxu0  ;;  %v855_v0 = vsel %vm240_vm2, %v853_v60, -inf }
 0x876   :  { %856 = vmax.xlane.f32.xlu1 %v855_v0  ;;  %v1701_v1 = vpop.f32.mrb[15].mxu0 }
 0x884   :  { %975 = vrot.lane.b32.xlu0 %v2049_v52, %s1894_s13 }
 0x887   :  { %986 = vrot.lane.b32.xlu1 %v982_v3, %s1894_s13 }
 0x88b   :  { %988 = vrot.lane.b32.xlu1 %v983_v5, %s1894_s13 }
 0x8fb   :  { %v860_v6 = vpop.xlane.xlu0 %859 }
 0x8fc   :  { %v862_v7 = vsub.f32 %v854_v55, %v860_v6 }
 0x8fe   :  { %v865_v8 = vmul.f32 1.442695, %v862_v7 }
 0x8ff   :  { %v976_v53 = vpop.permute.xlu0 %975 }
 0x900   :  { %1846 = vpow2.f32 %v865_v8  ;;  %v979_v14 = vmul.f32 %v976_v53, %v2005_v29  ;;  %v978_v18 = vmul.f32 %v976_v53, %v2002_v27 }
 0x903   :  { %v857_v34 = vpop.xlane.xlu1 %856 }
 0x904   :  { %v861_v32 = vsub.f32 %v853_v60, %v857_v34 }
 0x906   :  { %v863_v9 = vmul.f32 1.442695, %v861_v32 }
 0x907   :  { %v987_v38 = vpop.permute.xlu1 %986 }
 0x908   :  { %1848 = vpow2.f32 %v863_v9  ;;  %v992_v19 = vadd.f32 %v987_v38, %v978_v18 }
 0x90a   :  { %v1847_v52 = vpop.eup %1846  ;;  %v994_v20 = vpack.c.bf16 %v992_v19, %v992_v19 }
 0x90b   :  { %v870_v11 = vsel %vm240_vm2, %v1847_v52, 0.0  ;;  %v989_v13 = vpop.permute.xlu1 %988 }
 0x90c   :  { %871 = vadd.xlane.f32.xlu1 %v870_v11  ;;  %v993_v15 = vadd.f32 %v989_v13, %v979_v14  ;;  %v1796_v13 = vld [vmem:[%s2388_s8 + $0x4] ss:$8 sps:$4 sm:$0xff]  }
 0x90e   :  { %v995_v17 = vpack.c.bf16 %v993_v15, %v993_v15  ;;  %v1797_v15 = vld [vmem:[%s2388_s8 + $0x10] ss:$8 sps:$4 sm:$0xff]  }
 0x912   :  { %v1849_v12 = vpop.eup %1848 }
 0x913   :  { %v867_v50 = vsel %vm240_vm2, %v1849_v12, 0.0 }
 0x914   :  { %868 = vadd.xlane.f32.xlu0 %v867_v50 }
 0x91d   :  { %927 = vrot.lane.b32.xlu1 %v2107_v47, %s1895_s14 }
 0x921   :  { %1043 = vrot.lane.b32.xlu1 %v995_v17, %s1896_s2  ;;  %v1799_v17 = vld [vmem:[%s2388_s8 + $0x14] ss:$8 sps:$4 sm:$0xff]  }
 0x92a   :  { %879 = vrot.lane.b32.xlu0 %v2112_v48, %s1895_s14 }
 0x92e   :  { %997 = vrot.lane.b32.xlu0 %v994_v20, %s1896_s2 }
 0x999   :  { %v872_v21 = vpop.xlane.xlu1 %871 }
 0x99a   :  { %1850 = vrcp.f32 %v872_v21 }
 0x99d   :  { %v928_v22 = vpop.permute.xlu1 %927 }
 0x99e   :  { %v933_v23 = vsel %vm370_vm4, %v928_v22, 0 }
 0x99f   :  { %1715 = vmatpush3.bf16.msra.mxu1 %v933_v23 }
 0x9a0   :  { %1726 = vmatprep.subr.bf16.mxu1 %v1876_v2 }
 0x9a1   :  { %v869_v29 = vpop.xlane.xlu0 %868  ;;  %v1044_v40 = vpop.permute.xlu1 %1043 }
 0x9a2   :  { %1852 = vrcp.f32 %v869_v29 }
 0x9a4   :  { %v1851_v47 = vpop.eup %1850 }
 0x9a5   :  { %v876_v25 = vmul.f32 %v1851_v47, %v1847_v52  ;;  %v880_v26 = vpop.permute.xlu0 %879 }
 0x9a6   :  { %v885_v27 = vsel %vm370_vm4, %v880_v26, 0 }
 0x9a7   :  { %1709 = vmatpush3.bf16.msra.mxu0 %v885_v27  ;;  %v878_v35 = vpack.c.bf16 %v876_v25, %v876_v25 }
 0x9a8   :  { %1720 = vmatprep.subr.bf16.mxu0 %v1876_v2 }
 0x9a9   :  { %1717 = vmatmul.mubr.msk.bf16.vlgmr.msra.gmra.mrb[28].mxu1 %vm240_vm2, %v878_v35 }
 0x9aa   :  { %1727 = vmatpush3.bf16.xpose.msra.mxu1 %v2184_v28  ;;  %1728 = vmatprep.mubr.msk.bf16.mxu1 %vm1877_vm0, %v1876_v2  ;;  %v998_v28 = vpop.permute.xlu0 %997 }
 0x9ab   :  { %1738 = vmatprep.subr.bf16.mxu1 %v1876_v2 }
 0x9ac   :  { %v1853_v48 = vpop.eup %1852 }
 0x9ad   :  { %v875_v36 = vmul.f32 %v1853_v48, %v1849_v12 }
 0x9af   :  { %v877_v39 = vpack.c.bf16 %v875_v36, %v875_v36 }
 0x9b1   :  { %1711 = vmatmul.mubr.msk.bf16.vlgmr.msra.gmra.mrb[16].mxu0 %vm240_vm2, %v877_v39  ;;  %1729 = vmatmul.mubr.msk.bf16.vlgmr.msra.gmra.mrb[32].mxu1 %vm240_vm2, %v1044_v40 }
 0x9b2   :  { %1721 = vmatpush3.bf16.xpose.msra.mxu0 %v2189_v41  ;;  %1739 = vmatpush3.bf16.msra.mxu1 %v933_v23 }
 0x9b3   :  { %1722 = vmatprep.mubr.msk.bf16.mxu0 %vm1877_vm0, %v1876_v2  ;;  %1732 = vmatprep.subr.bf16.mxu0 %v1876_v2 }
 0x9b4   :  { %1740 = vmatprep.mubr.msk.bf16.mxu1 %vm1877_vm0, %v1876_v2  ;;  %1744 = vmatprep.subr.bf16.mxu1 %v1876_v2 }
 0x9b9   :  { %1723 = vmatmul.mubr.msk.bf16.vlgmr.msra.gmra.mrb[20].mxu0 %vm240_vm2, %v998_v28  ;;  %v1874_v28 = vld [vmem:[%s2381_s0] sm:$0xff] }
 0x9ba   :  { %1733 = vmatpush3.bf16.msra.mxu0 %v885_v27  ;;  %1734 = vmatprep.mubr.msk.bf16.mxu0 %vm1877_vm0, %v1876_v2 }
 0x9bb   :  { %1357 = vmatprep.subr.bf16.mxu0 %v1796_v13  ;;  %v1824_v13 = vld [vmem:[%s2390_s9 + $0x30] sm:$0xff]  }
 0xa7c   :  { %v969_v42 = vpop.f32.mrb[28].mxu1 }
 0xa7d   :  { %v1718_v41 = vpop.f32.mrb[29].mxu1 }
 0xa7e   :  { %v972_v43 = vpop.f32.mrb[30].mxu1 }
 0xa7f   :  { %v1719_v45 = vpop.f32.mrb[31].mxu1 }
 0xa84   :  { %v921_v46 = vpop.f32.mrb[16].mxu0  ;;  %v1082_v49 = vpop.f32.mrb[32].mxu1 }
 0xa85   :  { %v1089_v31 = vsel %vm2077_vm3, %v1082_v49, -1e+30  ;;  %v1712_v51 = vpop.f32.mrb[17].mxu0  ;;  %v1730_v54 = vpop.f32.mrb[33].mxu1  ;;  %v1875_v49 = vld [vmem:[%s2381_s0 + $0x8] sm:$0xff] }
 0xa86   :  { %v924_v33 = vpop.f32.mrb[18].mxu0  ;;  %v1085_v55 = vpop.f32.mrb[34].mxu1  ;;  %v1093_v56 = vsel %vm240_vm2, %v1089_v31, -inf  ;;  %v1802_v51 = vld [vmem:[%s2388_s8 + $0x24] ss:$8 sps:$4 sm:$0xff]  }
 0xa87   :  { %1094 = vmax.xlane.f32.xlu1 %v1093_v56  ;;  %v1713_v57 = vpop.f32.mrb[19].mxu0  ;;  %v1731_v58 = vpop.f32.mrb[35].mxu1  ;;  %v1800_v54 = vld [vmem:[%s2388_s8 + $0x20] ss:$8 sps:$4 sm:$0xff]   ;;  %v1805_v33 = vld [vmem:[%s2388_s8 + $0x34] ss:$8 sps:$4 sm:$0xff]  }
 0xa88   :  { %v1803_v55 = vld [vmem:[%s2388_s8 + $0x30] ss:$8 sps:$4 sm:$0xff]   ;;  %v1806_v56 = vld [vmem:[%s2388_s8 + $0x40] ss:$8 sps:$4 sm:$0xff]   ;;  %v1808_v57 = vld [vmem:[%s2388_s8 + $0x44] ss:$8 sps:$4 sm:$0xff]  }
 0xa89   :  { %v1811_v58 = vld [vmem:[%s2388_s8 + $0x54] ss:$8 sps:$4 sm:$0xff]  }
 0xa8c   :  { %v1036_v30 = vpop.f32.mrb[20].mxu0 }
 0xa8d   :  { %v1088_v59 = vsel %vm2077_vm3, %v1036_v30, -1e+30  ;;  %v1724_v60 = vpop.f32.mrb[21].mxu0  ;;  %v1809_v30 = vld [vmem:[%s2388_s8 + $0x50] ss:$8 sps:$4 sm:$0xff]  }
 0xa8e   :  { %v1039_v61 = vpop.f32.mrb[22].mxu0  ;;  %v1090_v62 = vsel %vm240_vm2, %v1088_v59, -inf  ;;  %v1814_v60 = vld [vmem:[%s2388_s8 + $0x64] ss:$8 sps:$4 sm:$0xff]  }
 0xa8f   :  { %1091 = vmax.xlane.f32.xlu0 %v1090_v62  ;;  %v1725_v0 = vpop.f32.mrb[23].mxu0  ;;  %v1812_v61 = vld [vmem:[%s2388_s8 + $0x60] ss:$8 sps:$4 sm:$0xff]   ;;  %v1817_v62 = vld [vmem:[%s2388_s8 + $0x74] ss:$8 sps:$4 sm:$0xff]  }
 0xa90   :  { %v1815_v0 = vld [vmem:[%s2388_s8 + $0x70] ss:$8 sps:$4 sm:$0xff]  }
 0xa98   :  { %1202 = vrot.lane.b32.xlu1 %v2204_v37, %s1885_s4 }
 0xa9c   :  { %1210 = vrot.lane.b32.xlu1 %v921_v46, %s1891_s30 }
 0xaa0   :  { %1212 = vrot.lane.b32.xlu1 %v969_v42, %s1891_s30 }
 0xb14   :  { %v1095_v1 = vpop.xlane.xlu1 %1094 }
 0xb15   :  { %v1097_v24 = vsub.f32 %v1089_v31, %v1095_v1 }
 0xb17   :  { %v1100_v5 = vmul.f32 1.442695, %v1097_v24 }
 0xb18   :  { %v1203_v29 = vpop.permute.xlu1 %1202 }
 0xb19   :  { %v1224_v26 = vsel %vm240_vm2, %v2139_v63, %v1203_v29 }
 0xb1c   :  { %v1092_v3 = vpop.xlane.xlu0 %1091  ;;  %v1211_v47 = vpop.permute.xlu1 %1210 }
 0xb1d   :  { %v1096_v4 = vsub.f32 %v1088_v59, %v1092_v3  ;;  %v1227_v27 = vsel %vm1226_vm5, %v1224_v26, %v1211_v47  ;;  %v1897_v59 = vmov 0  }
 0xb1f   :  { %v1098_v10 = vmul.f32 1.442695, %v1096_v4 }
 0xb20   :  { %v1213_v35 = vpop.permute.xlu1 %1212 }
 0xb21   :  { %1854 = vpow2.f32 %v1098_v10 }
 0xb22   :  { %1856 = vpow2.f32 %v1100_v5 }
 0xb2b   :  { %v1855_v6 = vpop.eup %1854 }
 0xb2c   :  { %v1102_v7 = vsel %vm240_vm2, %v1855_v6, 0.0  ;;  %v1857_v8 = vpop.eup %1856 }
 0xb2d   :  { %1103 = vadd.xlane.f32.xlu0 %v1102_v7  ;;  %v1105_v34 = vsel %vm240_vm2, %v1857_v8, 0.0 }
 0xb31   :  { %1106 = vadd.xlane.f32.xlu0 %v1105_v34  ;;  %v1553_v34 = vld [vmem:[%s2389_s7] ss:$0 sm:$0xff] }
 0xb47   :  { %1204 = vrot.lane.b32.xlu0 %v2202_v44, %s1885_s4  ;;  %v1794_v44 = vld [vmem:[%s2388_s8] ss:$8 sps:$4 sm:$0xff]  }
 0xbba   :  { %v1104_v37 = vpop.xlane.xlu0 %1103 }
 0xbbb   :  { %1858 = vrcp.f32 %v1104_v37 }
 0xbbe   :  { %v1107_v32 = vpop.xlane.xlu0 %1106 }
 0xbbf   :  { %1860 = vrcp.f32 %v1107_v32 }
 0xbc2   :  { %v1205_v25 = vpop.permute.xlu0 %1204 }
 0xbc3   :  { %v1225_v36 = vsel %vm240_vm2, %v2141_v16, %v1205_v25 }
 0xbc4   :  { %v1228_v43 = vsel %vm1226_vm5, %v1225_v36, %v1213_v35 }
 0xbc5   :  { %v1859_v9 = vpop.eup %1858 }
 0xbc6   :  { %v1110_v52 = vmul.f32 %v1859_v9, %v1855_v6 }
 0xbc8   :  { %v1112_v11 = vpack.c.bf16 %v1110_v52, %v1110_v52 }
 0xbc9   :  { %v1861_v12 = vpop.eup %1860 }
 0xbca   :  { %v1111_v38 = vmul.f32 %v1861_v12, %v1857_v8  ;;  %1735 = vmatmul.mubr.msk.bf16.vlgmr.msra.gmra.mrb[24].mxu0 %vm240_vm2, %v1112_v11  ;;  %v1818_v11 = vld [vmem:[%s2390_s9] sm:$0xff]   ;;  %v1819_v12 = vld [vmem:[%s2390_s9 + $0x8] sm:$0xff]  }
 0xbcb   :  { %1358 = vmatpush1.bf16.msra.mxu0 %v1794_v44  ;;  %1389 = vmatprep.mubr.bf16.mxu0 %v1897_v59  ;;  %v1822_v44 = vld [vmem:[%s2390_s9 + $0x20] sm:$0xff]  }
 0xbcc   :  { %v1113_v50 = vpack.c.bf16 %v1111_v38, %v1111_v38  ;;  %1359 = vmatprep.subr.bf16.mxu0 %v1799_v17  ;;  %v1820_v38 = vld [vmem:[%s2390_s9 + $0x10] sm:$0xff]  }
 0xbce   :  { %1741 = vmatmul.mubr.msk.bf16.vlgmr.msra.gmra.mrb[36].mxu1 %vm240_vm2, %v1113_v50  ;;  %v1821_v50 = vld [vmem:[%s2390_s9 + $0x18] sm:$0xff]  }
 0xbcf   :  { %1760 = vmatprep.mubr.msk.bf16.mxu1 %vm1877_vm0, %v1876_v2  ;;  %1360 = vmatpush1.bf16.msra.mxu0 %v1797_v15 }
 0xbd0   :  { %1361 = vmatprep.subr.bf16.mxu0 %v1802_v51  ;;  %1745 = vmatpush3.bf16.msra.mxu1 %v1818_v11 }
 0xbd1   :  { %1746 = vmatprep.subr.bf16.mxu1 %v1876_v2 }
 0xbd3   :  { %1362 = vmatpush1.bf16.msra.mxu0 %v1800_v54 }
 0xbd4   :  { %1363 = vmatprep.subr.bf16.mxu0 %v1805_v33  ;;  %1747 = vmatpush3.bf16.msra.mxu1 %v1819_v12 }
 0xbd5   :  { %1748 = vmatprep.subr.bf16.mxu1 %v1876_v2 }
 0xbd7   :  { %1364 = vmatpush1.bf16.msra.mxu0 %v1803_v55 }
 0xbd8   :  { %1365 = vmatprep.subr.bf16.mxu0 %v1808_v57  ;;  %1749 = vmatpush3.bf16.msra.mxu1 %v1820_v38 }
 0xbd9   :  { %1750 = vmatprep.subr.bf16.mxu1 %v1876_v2 }
 0xbdb   :  { %1366 = vmatpush1.bf16.msra.mxu0 %v1806_v56 }
 0xbdc   :  { %1367 = vmatprep.subr.bf16.mxu0 %v1811_v58  ;;  %1751 = vmatpush3.bf16.msra.mxu1 %v1821_v50 }
 0xbdd   :  { %1752 = vmatprep.subr.bf16.mxu1 %v1876_v2 }
 0xbdf   :  { %1368 = vmatpush1.bf16.msra.mxu0 %v1809_v30 }
 0xbe0   :  { %1369 = vmatprep.subr.bf16.mxu0 %v1814_v60  ;;  %1753 = vmatpush3.bf16.msra.mxu1 %v1822_v44 }
 0xbe1   :  { %1754 = vmatprep.subr.bf16.mxu1 %v1876_v2 }
 0xbe3   :  { %1370 = vmatpush1.bf16.msra.mxu0 %v1812_v61 }
 0xbe4   :  { %1371 = vmatprep.subr.bf16.mxu0 %v1817_v62 }
 0xbe7   :  { %1372 = vmatpush1.bf16.msra.mxu0 %v1815_v0 }
 0xc9d   :  { %v1151_v53 = vpop.f32.mrb[24].mxu0 }
 0xc9e   :  { %1218 = vrot.lane.b32.xlu0 %v1151_v53, %s1894_s13  ;;  %v1736_v14 = vpop.f32.mrb[25].mxu0  ;;  %v1823_v53 = vld [vmem:[%s2390_s9 + $0x28] sm:$0xff]  }
 0xc9f   :  { %v1154_v18 = vpop.f32.mrb[26].mxu0  ;;  %1755 = vmatpush3.bf16.msra.mxu1 %v1823_v53  ;;  %v1825_v14 = vld [vmem:[%s2390_s9 + $0x38] sm:$0xff]  }
 0xca0   :  { %v1737_v19 = vpop.f32.mrb[27].mxu0  ;;  %1756 = vmatprep.subr.bf16.mxu1 %v1876_v2 }
 0xca1   :  { %v1194_v20 = vpop.f32.mrb[36].mxu1 }
 0xca2   :  { %1220 = vrot.lane.b32.xlu1 %v1194_v20, %s1894_s13  ;;  %v1742_v21 = vpop.f32.mrb[37].mxu1 }
 0xca3   :  { %v1197_v22 = vpop.f32.mrb[38].mxu1  ;;  %1757 = vmatpush3.bf16.msra.mxu1 %v1824_v13 }
 0xca4   :  { %v1743_v23 = vpop.f32.mrb[39].mxu1  ;;  %1758 = vmatprep.subr.bf16.mxu1 %v1876_v2 }
 0xca7   :  { %1759 = vmatpush3.bf16.msra.mxu1 %v1825_v14 }
 0xd10   :  { %v1219_v48 = vpop.permute.xlu0 %1218 }
 0xd11   :  { %v1230_v39 = vsel %vm1229_vm6, %v1227_v27, %v1219_v48 }
 0xd12   :  { %v1233_v40 = vsel %vm1232_vm7, %v1230_v39, 0.0 }
 0xd13   :  { %v2290_v42 = vadd.f32 %v1874_v28, %v1233_v40 }
 0xd14   :  { %v1221_v41 = vpop.permute.xlu1 %1220 }
 0xd15   :  { %v1231_v45 = vsel %vm1229_vm6, %v1228_v43, %v1221_v41  ;;  %v1238_v63 = vmul.f32 %v2290_v42, %v2290_v42 }
 0xd16   :  { %v1234_v46 = vsel %vm1232_vm7, %v1231_v45, 0.0 }
 0xd17   :  { %v2297_v16 = vadd.f32 %v1875_v49, %v1234_v46  ;;  %1240 = vadd.xlane.f32.xlu0 %v1238_v63 }
 0xd19   :  { %v1239_v31 = vmul.f32 %v2297_v16, %v2297_v16 }
 0xd1b   :  { %1242 = vadd.xlane.f32.xlu1 %v1239_v31 }
 0xda4   :  { %v1241_v1 = vpop.xlane.xlu0 %1240 }
 0xda5   :  { %v1244_v24 = vmul.f32 0.03125, %v1241_v1 }
 0xda7   :  { %v1246_v3 = vadd.f32 1e-05, %v1244_v24 }
 0xda8   :  { %v1243_v4 = vpop.xlane.xlu1 %1242 }
 0xda9   :  { %1862 = vrsqrt.f32 %v1246_v3  ;;  %v1245_v5 = vmul.f32 0.03125, %v1243_v4 }
 0xdab   :  { %v1247_v10 = vadd.f32 1e-05, %v1245_v5 }
 0xdad   :  { %1864 = vrsqrt.f32 %v1247_v10 }
 0xdb3   :  { %v1863_v6 = vpop.eup %1862 }
 0xdb4   :  { %v1250_v7 = vmul.f32 %v1863_v6, %v2290_v42 }
 0xdb6   :  { %v1258_v32 = vmul.f32 %v1553_v34, %v1250_v7 }
 0xdb7   :  { %v1865_v8 = vpop.eup %1864 }
 0xdb8   :  { %v1251_v37 = vmul.f32 %v1865_v8, %v2297_v16 }
 0xdba   :  { %v1259_v9 = vmul.f32 %v1553_v34, %v1251_v37 }
 0xdbc   :  { %v1260_v52 = vpack.c.bf16 %v1259_v9, %v1258_v32 }
 0xdbe   :  { %1390 = vmatmul.mubr.bf16.vlgmr.msra.gmra.mrb[28].mxu0 %v1260_v52 }
 0xe91   :  { %v1391_v15 = vpop.f32.mrb[28].mxu0 }
 0xe92   :  { %v1400_v17 = vsub.f32 0.0, %v1391_v15  ;;  %v1393_v18 = vpop.f32.mrb[29].mxu0 }
 0xe93   :  { %v1395_v19 = vpop.f32.mrb[30].mxu0 }
 0xe94   :  { %v1402_v20 = vmul.f32 1.442695, %v1400_v17  ;;  %v1401_v21 = vsub.f32 0.0, %v1395_v19  ;;  %v1397_v22 = vpop.f32.mrb[31].mxu0 }
 0xe96   :  { %1866 = vpow2.f32 %v1402_v20  ;;  %v1404_v23 = vmul.f32 1.442695, %v1401_v21 }
 0xe98   :  { %1868 = vpow2.f32 %v1404_v23 }
 0xea0   :  { %v1867_v29 = vpop.eup %1866 }
 0xea1   :  { %v1406_v47 = vadd.f32 1.0, %v1867_v29 }
 0xea2   :  { %v1869_v25 = vpop.eup %1868 }
 0xea3   :  { %1870 = vrcp.f32 %v1406_v47  ;;  %v1407_v2 = vadd.f32 1.0, %v1869_v25 }
 0xea5   :  { %1872 = vrcp.f32 %v1407_v2 }
 0xead   :  { %v1871_v26 = vpop.eup %1870 }
 0xeae   :  { %v1410_v27 = vmul.f32 %v1871_v26, %v1391_v15 }
 0xeaf   :  { %v1873_v35 = vpop.eup %1872 }
 0xeb0   :  { %v1412_v48 = vmul.f32 %v1410_v27, %v1393_v18  ;;  %v1411_v36 = vmul.f32 %v1873_v35, %v1395_v19 }
 0xeb2   :  { %v1413_v39 = vmul.f32 %v1411_v36, %v1397_v22 }
 0xeb4   :  { %v1414_v40 = vpack.c.bf16 %v1413_v39, %v1412_v48 }
 0xeb6   :  { %1761 = vmatmul.mubr.bf16.vlgmr.msra.gmra.mrb[40].mxu1 %v1414_v40 }
 0xf89   :  { %v1513_v28 = vpop.f32.mrb[40].mxu1 }
 0xf8a   :  { %v1520_v41 = vadd.f32 %v1513_v28, %v2290_v42  ;;  %v1762_v43 = vpop.f32.mrb[41].mxu1 }
 0xf8b   :  { %v1516_v45 = vpop.f32.mrb[42].mxu1 }
 0xf8c   :  { %1522 = vst [vmem:[%s2391_s10] sm:$0xff] %v1520_v41  ;;  %v1521_v63 = vadd.f32 %v1516_v45, %v2297_v16  ;;  %v1763_v46 = vpop.f32.mrb[43].mxu1 }
 0xf8e   :  { %1523 = vst [vmem:[%s2391_s10 + $0x8] sm:$0xff] %v1521_v63 }

</bundles_post_ra>
